<compile_context>
chip_gen: v6e
topology: v6e:2x2x1
jax: 0.10.0
libtpu: 0.0.40
codegen_flags: <defaults>
</compile_context>

<pallas_src>
import numpy as np
import jax
import jax.numpy as jnp
from jax.experimental import pallas as pl
from jax.experimental.pallas import tpu as pltpu


def _make_mbconv_kernel(H, W, pad):
    N = H * W

    def kernel(x_ref, w1_ref, dw_ref, mask_ref,
               wse1_ref, bse1_ref, wse2_ref, bse2_ref,
               w34_ref, w5_ref,
               bns_ref, bnb_ref, bns2_ref, bnb2_ref, bn2s_ref, bn2b_ref,
               out_ref, buf_ref):
        C2 = w1_ref.shape[0]
        x = x_ref[0]                                   # (Cin, N)

        def sigmoid(v):
            # exp and the approximate reciprocal both go to the EUP slot (frees VALU).
            return pl.reciprocal(1.0 + jnp.exp(-v), approx=True)

        def bn_silu(v, scale, shift):
            y = v * scale + shift
            return y * sigmoid(y)

        # TODO(synk): on v6e/v7x the matmul operands could additionally be cast to
        #             bf16 (f32 accumulation) for 2x MXU rate; kept f32 for parity.

        # conv1 (pointwise Cin -> C2) + bn + SiLU.  h == x1 in the PyTorch code.
        h = bn_silu(jnp.dot(w1_ref[...], x, preferred_element_type=jnp.float32),
                    bns_ref[...], bnb_ref[...])        # (C2, N)

        # conv2: 3x3 depthwise, padding=1.  Write h into a zero-padded flat row
        # buffer (pad is a multiple of 128 so all stores are lane-aligned), then
        # accumulate 9 statically shifted reads with per-channel tap weights;
        # mask zeroes positions whose 3x3 neighbour falls outside the HxW image.
        # NOTE: the pad zeroing is done EVERY grid step on purpose -- with the
        # "parallel" batch axis each megacore gets its own scratch instance.
        buf_ref[:, :pad] = jnp.zeros((C2, pad), jnp.float32)
        buf_ref[:, pad + N:] = jnp.zeros((C2, pad), jnp.float32)
        buf_ref[:, pad:pad + N] = h

        d = dw_ref[4] * h                              # centre tap: no shift, no mask
        for t in range(9):                             # static unroll over the 9 taps
            if t == 4:
                continue
            di, dj = t // 3 - 1, t % 3 - 1
            start = pad + di * W + dj
            sh = buf_ref[:, start:start + N]           # (C2, N) shifted view of h
            d = d + dw_ref[t] * (mask_ref[t:t + 1, :] * sh)
        d = bn_silu(d, bns_ref[...], bnb_ref[...])

        # SE block: global average pool (lane reduction) -> FC -> ReLU -> FC -> sigmoid.
        # (SE hidden dim is zero-padded to a sublane multiple on the host; the padded
        #  rows stay exactly zero through ReLU so the result is unchanged.)
        pooled = jnp.mean(d, axis=1, keepdims=True)    # (C2, 1), kept in f32
        e = jnp.dot(wse1_ref[...], pooled,
                    preferred_element_type=jnp.float32) + bse1_ref[...]
        e = jnp.maximum(e, 0.0)
        e = jnp.dot(wse2_ref[...], e,
                    preferred_element_type=jnp.float32) + bse2_ref[...]
        s = d * sigmoid(e)                             # (C2, N)

        # conv3 (on s) and conv4 (on x1 == h) fused as one block-diagonal matmul;
        # the channel concat + conv5 is a single (Cout, 2*C2) matmul.
        st = jnp.concatenate([s, h], axis=0)           # (2*C2, N)
        ab = bn_silu(jnp.dot(w34_ref[...], st, preferred_element_type=jnp.float32),
                     bns2_ref[...], bnb2_ref[...])     # (2*C2, N) = [conv3 ; conv4]
        o = jnp.dot(w5_ref[...], ab, preferred_element_type=jnp.float32)
        y = o * bn2s_ref[...] + bn2b_ref[...]
        out_ref[0] = (y * sigmoid(y)).astype(out_ref.dtype)

    return kernel


def make_tap_masks(H, W):
    """(9, H*W) f32 masks: mask[t, i*W+j] = 1 iff neighbour (i+di, j+dj) is in-bounds."""
    masks = np.zeros((9, H * W), dtype=np.float32)
    ii, jj = np.meshgrid(np.arange(H), np.arange(W), indexing='ij')
    for t in range(9):
        di, dj = t // 3 - 1, t % 3 - 1
        valid = (ii + di >= 0) & (ii + di < H) & (jj + dj >= 0) & (jj + dj < W)
        masks[t] = valid.reshape(-1).astype(np.float32)
    return masks


def init_params(key, in_feature, out_feature, r=6):
    C2 = in_feature // 2
    Chid = C2 // r
    assert Chid >= 1, "in_feature//2 must be >= r for SEBlock"
    ks = jax.random.split(key, 17)
    n = lambda k, shape, s=0.1: s * jax.random.normal(k, shape, jnp.float32)
    return dict(
        w1=n(ks[0], (C2, in_feature)),          # conv1 weight (out, in)
        dw=n(ks[1], (C2, 1, 3, 3)),             # conv2 depthwise weight
        wse1=n(ks[2], (Chid, C2)),              # SE fc1
        bse1=n(ks[3], (Chid,)),
        wse2=n(ks[4], (C2, Chid)),              # SE fc2
        bse2=n(ks[5], (C2,)),
        w3=n(ks[6], (C2, C2)),
        w4=n(ks[7], (C2, C2)),
        w5=n(ks[8], (out_feature, in_feature)),
        bn_gamma=1.0 + n(ks[9], (C2,)),
        bn_beta=n(ks[10], (C2,)),
        bn_mean=n(ks[11], (C2,)),
        bn_var=0.5 + jnp.abs(n(ks[12], (C2,), 0.5)),
        bn2_gamma=1.0 + n(ks[13], (out_feature,)),
        bn2_beta=n(ks[14], (out_feature,)),
        bn2_mean=n(ks[15], (out_feature,)),
        bn2_var=0.5 + jnp.abs(n(ks[16], (out_feature,), 0.5)),
    )


def mbconv_pallas(x_nchw, p):
    B, Cin, H, W = x_nchw.shape
    N = H * W
    C2 = Cin // 2
    Cout = p['w5'].shape[0]
    Chid = p['wse1'].shape[0]
    eps = 1e-5

    # NCHW -> (B, C, N): pure reshape; channels on sublanes, N = H*W on lanes.
    x = x_nchw.reshape(B, Cin, N).astype(jnp.float32)
    mask = jnp.asarray(make_tap_masks(H, W))                 # (9, N)

    # Fold BatchNorm (inference form) into per-channel scale/shift column vectors.
    bn_scale = p['bn_gamma'] / jnp.sqrt(p['bn_var'] + eps)
    bns = bn_scale.reshape(C2, 1)
    bnb = (p['bn_beta'] - p['bn_mean'] * bn_scale).reshape(C2, 1)
    bns2 = jnp.concatenate([bns, bns], axis=0)               # shared self.bn on both halves
    bnb2 = jnp.concatenate([bnb, bnb], axis=0)
    bn2_scale = p['bn2_gamma'] / jnp.sqrt(p['bn2_var'] + eps)
    bn2s = bn2_scale.reshape(Cout, 1)
    bn2b = (p['bn2_beta'] - p['bn2_mean'] * bn2_scale).reshape(Cout, 1)

    w1 = p['w1']                                             # (C2, Cin)
    dw = p['dw'].reshape(C2, 9).T.reshape(9, C2, 1)          # per-tap (C2,1), t = ki*3+kj

    # SE weights, hidden dim zero-padded up to a sublane multiple (8) for a clean
    # MXU/VPU layout; padded rows go through ReLU as exact zeros (no effect).
    Chid_p = ((Chid + 7) // 8) * 8
    wse1 = jnp.zeros((Chid_p, C2), jnp.float32).at[:Chid, :].set(p['wse1'])
    bse1 = jnp.zeros((Chid_p, 1), jnp.float32).at[:Chid, :].set(p['bse1'].reshape(Chid, 1))
    wse2 = jnp.zeros((C2, Chid_p), jnp.float32).at[:, :Chid].set(p['wse2'])
    bse2 = p['bse2'].reshape(C2, 1)

    # conv3 + conv4 fused into one block-diagonal weight applied to [s ; x1].
    w34 = jnp.zeros((2 * C2, 2 * C2), jnp.float32)
    w34 = w34.at[:C2, :C2].set(p['w3'])
    w34 = w34.at[C2:, C2:].set(p['w4'])
    w5 = p['w5']                                             # (Cout, 2*C2), matches concat order

    PAD = ((W + 1 + 127) // 128) * 128                       # lane-aligned zero pad of row buffer

    in_arrays = [x, w1, dw, mask, wse1, bse1, wse2, bse2,
                 w34, w5, bns, bnb, bns2, bnb2, bn2s, bn2b]

    def full_spec(a):
        nd = a.ndim
        return pl.BlockSpec(a.shape, lambda b, _nd=nd: (0,) * _nd)

    in_specs = ([pl.BlockSpec((1, Cin, N), lambda b: (b, 0, 0))]
                + [full_spec(a) for a in in_arrays[1:]])

    out = pl.pallas_call(
        _make_mbconv_kernel(H, W, PAD),
        out_shape=jax.ShapeDtypeStruct((B, Cout, N), jnp.float32),
        grid=(B,),
        in_specs=in_specs,
        out_specs=pl.BlockSpec((1, Cout, N), lambda b: (b, 0, 0)),
        scratch_shapes=[pltpu.VMEM((C2, N + 2 * PAD), jnp.float32)],
        compiler_params=pltpu.CompilerParams(
            dimension_semantics=("parallel",)),
        # TODO(synk): for B=1 on v7x (2 TensorCores) add a second parallel grid
        #             axis over tiles of N (with a 1-row halo) to use both cores.
    )(*in_arrays)

    return out.reshape(B, Cout, H, W)


def mbconv_reference(x, p):
    """Pure-JAX reference with the same assumed helper semantics (NCHW)."""
    eps = 1e-5

    def silu(v):
        return v * jax.nn.sigmoid(v)

    def bn(v, g, b, m, var):
        return ((v - m[None, :, None, None])
                / jnp.sqrt(var[None, :, None, None] + eps)
                * g[None, :, None, None] + b[None, :, None, None])

    def pw(v, w):                                  # 1x1 conv, w (out, in)
        return jnp.einsum('bchw,oc->bohw', v, w)

    bn1 = lambda v: bn(v, p['bn_gamma'], p['bn_beta'], p['bn_mean'], p['bn_var'])

    h = silu(bn1(pw(x, p['w1'])))
    x1 = h
    C2 = h.shape[1]
    d = jax.lax.conv_general_dilated(
        h, p['dw'], window_strides=(1, 1), padding=((1, 1), (1, 1)),
        feature_group_count=C2, dimension_numbers=('NCHW', 'OIHW', 'NCHW'))
    d = silu(bn1(d))
    pooled = jnp.mean(d, axis=(2, 3))              # (B, C2)
    e = jnp.maximum(pooled @ p['wse1'].T + p['bse1'], 0.0)
    e = jax.nn.sigmoid(e @ p['wse2'].T + p['bse2'])
    s = d * e[:, :, None, None]
    a = silu(bn1(pw(s, p['w3'])))
    b = silu(bn1(pw(x1, p['w4'])))
    cat = jnp.concatenate([a, b], axis=1)
    o = silu(bn(pw(cat, p['w5']),
                p['bn2_gamma'], p['bn2_beta'], p['bn2_mean'], p['bn2_var']))
    return o


if __name__ == "__main__":
    key = jax.random.PRNGKey(0)
    in_feature, out_feature, r = 32, 32, 6
    B, H, W = 2, 16, 16

    kx, kp = jax.random.split(key)
    x = jax.random.normal(kx, (B, in_feature, H, W), jnp.float32)
    params = init_params(kp, in_feature, out_feature, r)

    out = mbconv_pallas(x, params)
    out = jax.block_until_ready(out)

    ref = mbconv_reference(x, params)
    np.testing.assert_allclose(np.asarray(out), np.asarray(ref),
                               rtol=2e-2, atol=5e-3)
    print("KERNEL_OK")
</pallas_src>

<mosaic_0001>
module attributes {stable_mosaic.version = 11 : i64} {
  func.func @kernel(%arg0: i32, %arg1: memref<1x32x256xf32, #tpu.memory_space<vmem>>, %arg2: memref<16x32xf32, #tpu.memory_space<vmem>>, %arg3: memref<9x16x1xf32, #tpu.memory_space<vmem>>, %arg4: memref<9x256xf32, #tpu.memory_space<vmem>>, %arg5: memref<8x16xf32, #tpu.memory_space<vmem>>, %arg6: memref<8x1xf32, #tpu.memory_space<vmem>>, %arg7: memref<16x8xf32, #tpu.memory_space<vmem>>, %arg8: memref<16x1xf32, #tpu.memory_space<vmem>>, %arg9: memref<32x32xf32, #tpu.memory_space<vmem>>, %arg10: memref<32x32xf32, #tpu.memory_space<vmem>>, %arg11: memref<16x1xf32, #tpu.memory_space<vmem>>, %arg12: memref<16x1xf32, #tpu.memory_space<vmem>>, %arg13: memref<32x1xf32, #tpu.memory_space<vmem>>, %arg14: memref<32x1xf32, #tpu.memory_space<vmem>>, %arg15: memref<32x1xf32, #tpu.memory_space<vmem>>, %arg16: memref<32x1xf32, #tpu.memory_space<vmem>>, %arg17: memref<1x32x256xf32, #tpu.memory_space<vmem>>, %arg18: memref<16x512xf32, #tpu.memory_space<vmem>>) attributes {dimension_semantics = [#tpu.dimension_semantics<parallel>], iteration_bounds = array<i64: 2>, scalar_prefetch = 0 : i64, scratch_operands = 1 : i64, tpu.core_type = #tpu.core_type<tc>, window_params = [{transform_indices = @transform_0, window_bounds = array<i64: 1, 32, 256>}, {pipeline_mode = #tpu.pipeline_mode<synchronous>, transform_indices = @transform_1, window_bounds = array<i64: 16, 32>}, {pipeline_mode = #tpu.pipeline_mode<synchronous>, transform_indices = @transform_2, window_bounds = array<i64: 9, 16, 1>}, {pipeline_mode = #tpu.pipeline_mode<synchronous>, transform_indices = @transform_3, window_bounds = array<i64: 9, 256>}, {pipeline_mode = #tpu.pipeline_mode<synchronous>, transform_indices = @transform_4, window_bounds = array<i64: 8, 16>}, {pipeline_mode = #tpu.pipeline_mode<synchronous>, transform_indices = @transform_5, window_bounds = array<i64: 8, 1>}, {pipeline_mode = #tpu.pipeline_mode<synchronous>, transform_indices = @transform_6, window_bounds = array<i64: 16, 8>}, {pipeline_mode = #tpu.pipeline_mode<synchronous>, transform_indices = @transform_7, window_bounds = array<i64: 16, 1>}, {pipeline_mode = #tpu.pipeline_mode<synchronous>, transform_indices = @transform_8, window_bounds = array<i64: 32, 32>}, {pipeline_mode = #tpu.pipeline_mode<synchronous>, transform_indices = @transform_9, window_bounds = array<i64: 32, 32>}, {pipeline_mode = #tpu.pipeline_mode<synchronous>, transform_indices = @transform_10, window_bounds = array<i64: 16, 1>}, {pipeline_mode = #tpu.pipeline_mode<synchronous>, transform_indices = @transform_11, window_bounds = array<i64: 16, 1>}, {pipeline_mode = #tpu.pipeline_mode<synchronous>, transform_indices = @transform_12, window_bounds = array<i64: 32, 1>}, {pipeline_mode = #tpu.pipeline_mode<synchronous>, transform_indices = @transform_13, window_bounds = array<i64: 32, 1>}, {pipeline_mode = #tpu.pipeline_mode<synchronous>, transform_indices = @transform_14, window_bounds = array<i64: 32, 1>}, {pipeline_mode = #tpu.pipeline_mode<synchronous>, transform_indices = @transform_15, window_bounds = array<i64: 32, 1>}, {transform_indices = @transform_16, window_bounds = array<i64: 1, 32, 256>}]} {
    %c0 = arith.constant 0 : index
    %c0_0 = arith.constant 0 : index
    %c0_1 = arith.constant 0 : index
    %0 = vector.load %arg1[%c0, %c0_0, %c0_1] : memref<1x32x256xf32, #tpu.memory_space<vmem>>, vector<1x32x256xf32>
    %1 = vector.shape_cast %0 : vector<1x32x256xf32> to vector<32x256xf32>
    %c0_2 = arith.constant 0 : index
    %c0_3 = arith.constant 0 : index
    %2 = vector.load %arg2[%c0_2, %c0_3] : memref<16x32xf32, #tpu.memory_space<vmem>>, vector<16x32xf32>
    %cst = arith.constant dense<0.000000e+00> : vector<16x256xf32>
    %3 = tpu.matmul %2, %1, %cst {dimension_numbers = #tpu.dot_dimension_numbers<[1], [0], [0], [1], [0, 0, 1, 1], [], []>} : vector<16x32xf32>, vector<32x256xf32>, vector<16x256xf32> -> vector<16x256xf32>
    %c0_4 = arith.constant 0 : index
    %c0_5 = arith.constant 0 : index
    %4 = vector.load %arg11[%c0_4, %c0_5] : memref<16x1xf32, #tpu.memory_space<vmem>>, vector<16x1xf32>
    %c0_6 = arith.constant 0 : index
    %c0_7 = arith.constant 0 : index
    %5 = vector.load %arg12[%c0_6, %c0_7] : memref<16x1xf32, #tpu.memory_space<vmem>>, vector<16x1xf32>
    %6 = vector.broadcast %4 : vector<16x1xf32> to vector<16x256xf32>
    %7 = arith.mulf %3, %6 : vector<16x256xf32>
    %8 = vector.broadcast %5 : vector<16x1xf32> to vector<16x256xf32>
    %9 = arith.addf %7, %8 : vector<16x256xf32>
    %cst_8 = arith.constant 0.000000e+00 : f32
    %10 = vector.broadcast %cst_8 : f32 to vector<16x256xf32>
    %11 = arith.subf %10, %9 : vector<16x256xf32>
    %12 = math.exp %11 : vector<16x256xf32>
    %cst_9 = arith.constant 1.000000e+00 : f32
    %13 = vector.broadcast %cst_9 : f32 to vector<16x256xf32>
    %14 = arith.addf %13, %12 : vector<16x256xf32>
    %15 = tpu.reciprocal %14 {approx = true} : vector<16x256xf32> -> vector<16x256xf32>
    %16 = arith.mulf %9, %15 : vector<16x256xf32>
    %cst_10 = arith.constant 0.000000e+00 : f32
    %17 = vector.broadcast %cst_10 : f32 to vector<16x128xf32>
    %c0_11 = arith.constant 0 : index
    %c0_12 = arith.constant 0 : index
    %18 = vector.load %arg18[%c0_11, %c0_12] : memref<16x512xf32, #tpu.memory_space<vmem>>, vector<16x128xf32>
    tpu.vector_store %arg18[%c0_11, %c0_12], %17 {strides = array<i32>} : memref<16x512xf32, #tpu.memory_space<vmem>>, vector<16x128xf32>,
    %cst_13 = arith.constant 0.000000e+00 : f32
    %19 = vector.broadcast %cst_13 : f32 to vector<16x128xf32>
    %c0_14 = arith.constant 0 : index
    %c384 = arith.constant 384 : index
    %20 = vector.load %arg18[%c0_14, %c384] : memref<16x512xf32, #tpu.memory_space<vmem>>, vector<16x128xf32>
    tpu.vector_store %arg18[%c0_14, %c384], %19 {strides = array<i32>} : memref<16x512xf32, #tpu.memory_space<vmem>>, vector<16x128xf32>,
    %c0_15 = arith.constant 0 : index
    %c128 = arith.constant 128 : index
    %21 = vector.load %arg18[%c0_15, %c128] : memref<16x512xf32, #tpu.memory_space<vmem>>, vector<16x256xf32>
    tpu.vector_store %arg18[%c0_15, %c128], %16 {strides = array<i32>} : memref<16x512xf32, #tpu.memory_space<vmem>>, vector<16x256xf32>,
    %c4 = arith.constant 4 : index
    %c0_16 = arith.constant 0 : index
    %c0_17 = arith.constant 0 : index
    %22 = vector.load %arg3[%c4, %c0_16, %c0_17] : memref<9x16x1xf32, #tpu.memory_space<vmem>>, vector<1x16x1xf32>
    %23 = vector.shape_cast %22 : vector<1x16x1xf32> to vector<16x1xf32>
    %24 = vector.broadcast %23 : vector<16x1xf32> to vector<16x256xf32>
    %25 = arith.mulf %24, %16 : vector<16x256xf32>
    %c0_18 = arith.constant 0 : index
    %c111 = arith.constant 111 : index
    %26 = vector.load %arg18[%c0_18, %c111] : memref<16x512xf32, #tpu.memory_space<vmem>>, vector<16x256xf32>
    %c0_19 = arith.constant 0 : index
    %c0_20 = arith.constant 0 : index
    %c0_21 = arith.constant 0 : index
    %27 = vector.load %arg3[%c0_19, %c0_20, %c0_21] : memref<9x16x1xf32, #tpu.memory_space<vmem>>, vector<1x16x1xf32>
    %28 = vector.shape_cast %27 : vector<1x16x1xf32> to vector<16x1xf32>
    %c0_22 = arith.constant 0 : index
    %c0_23 = arith.constant 0 : index
    %29 = vector.load %arg4[%c0_22, %c0_23] : memref<9x256xf32, #tpu.memory_space<vmem>>, vector<1x256xf32>
    %30 = vector.broadcast %29 : vector<1x256xf32> to vector<16x256xf32>
    %31 = arith.mulf %30, %26 : vector<16x256xf32>
    %32 = vector.broadcast %28 : vector<16x1xf32> to vector<16x256xf32>
    %33 = arith.mulf %32, %31 : vector<16x256xf32>
    %34 = arith.addf %25, %33 : vector<16x256xf32>
    %c0_24 = arith.constant 0 : index
    %c112 = arith.constant 112 : index
    %35 = vector.load %arg18[%c0_24, %c112] : memref<16x512xf32, #tpu.memory_space<vmem>>, vector<16x256xf32>
    %c1 = arith.constant 1 : index
    %c0_25 = arith.constant 0 : index
    %c0_26 = arith.constant 0 : index
    %36 = vector.load %arg3[%c1, %c0_25, %c0_26] : memref<9x16x1xf32, #tpu.memory_space<vmem>>, vector<1x16x1xf32>
    %37 = vector.shape_cast %36 : vector<1x16x1xf32> to vector<16x1xf32>
    %c1_27 = arith.constant 1 : index
    %c0_28 = arith.constant 0 : index
    %38 = vector.load %arg4[%c1_27, %c0_28] : memref<9x256xf32, #tpu.memory_space<vmem>>, vector<1x256xf32>
    %39 = vector.broadcast %38 : vector<1x256xf32> to vector<16x256xf32>
    %40 = arith.mulf %39, %35 : vector<16x256xf32>
    %41 = vector.broadcast %37 : vector<16x1xf32> to vector<16x256xf32>
    %42 = arith.mulf %41, %40 : vector<16x256xf32>
    %43 = arith.addf %34, %42 : vector<16x256xf32>
    %c0_29 = arith.constant 0 : index
    %c113 = arith.constant 113 : index
    %44 = vector.load %arg18[%c0_29, %c113] : memref<16x512xf32, #tpu.memory_space<vmem>>, vector<16x256xf32>
    %c2 = arith.constant 2 : index
    %c0_30 = arith.constant 0 : index
    %c0_31 = arith.constant 0 : index
    %45 = vector.load %arg3[%c2, %c0_30, %c0_31] : memref<9x16x1xf32, #tpu.memory_space<vmem>>, vector<1x16x1xf32>
    %46 = vector.shape_cast %45 : vector<1x16x1xf32> to vector<16x1xf32>
    %c2_32 = arith.constant 2 : index
    %c0_33 = arith.constant 0 : index
    %47 = vector.load %arg4[%c2_32, %c0_33] : memref<9x256xf32, #tpu.memory_space<vmem>>, vector<1x256xf32>
    %48 = vector.broadcast %47 : vector<1x256xf32> to vector<16x256xf32>
    %49 = arith.mulf %48, %44 : vector<16x256xf32>
    %50 = vector.broadcast %46 : vector<16x1xf32> to vector<16x256xf32>
    %51 = arith.mulf %50, %49 : vector<16x256xf32>
    %52 = arith.addf %43, %51 : vector<16x256xf32>
    %c0_34 = arith.constant 0 : index
    %c127 = arith.constant 127 : index
    %53 = vector.load %arg18[%c0_34, %c127] : memref<16x512xf32, #tpu.memory_space<vmem>>, vector<16x256xf32>
    %c3 = arith.constant 3 : index
    %c0_35 = arith.constant 0 : index
    %c0_36 = arith.constant 0 : index
    %54 = vector.load %arg3[%c3, %c0_35, %c0_36] : memref<9x16x1xf32, #tpu.memory_space<vmem>>, vector<1x16x1xf32>
    %55 = vector.shape_cast %54 : vector<1x16x1xf32> to vector<16x1xf32>
    %c3_37 = arith.constant 3 : index
    %c0_38 = arith.constant 0 : index
    %56 = vector.load %arg4[%c3_37, %c0_38] : memref<9x256xf32, #tpu.memory_space<vmem>>, vector<1x256xf32>
    %57 = vector.broadcast %56 : vector<1x256xf32> to vector<16x256xf32>
    %58 = arith.mulf %57, %53 : vector<16x256xf32>
    %59 = vector.broadcast %55 : vector<16x1xf32> to vector<16x256xf32>
    %60 = arith.mulf %59, %58 : vector<16x256xf32>
    %61 = arith.addf %52, %60 : vector<16x256xf32>
    %c0_39 = arith.constant 0 : index
    %c129 = arith.constant 129 : index
    %62 = vector.load %arg18[%c0_39, %c129] : memref<16x512xf32, #tpu.memory_space<vmem>>, vector<16x256xf32>
    %c5 = arith.constant 5 : index
    %c0_40 = arith.constant 0 : index
    %c0_41 = arith.constant 0 : index
    %63 = vector.load %arg3[%c5, %c0_40, %c0_41] : memref<9x16x1xf32, #tpu.memory_space<vmem>>, vector<1x16x1xf32>
    %64 = vector.shape_cast %63 : vector<1x16x1xf32> to vector<16x1xf32>
    %c5_42 = arith.constant 5 : index
    %c0_43 = arith.constant 0 : index
    %65 = vector.load %arg4[%c5_42, %c0_43] : memref<9x256xf32, #tpu.memory_space<vmem>>, vector<1x256xf32>
    %66 = vector.broadcast %65 : vector<1x256xf32> to vector<16x256xf32>
    %67 = arith.mulf %66, %62 : vector<16x256xf32>
    %68 = vector.broadcast %64 : vector<16x1xf32> to vector<16x256xf32>
    %69 = arith.mulf %68, %67 : vector<16x256xf32>
    %70 = arith.addf %61, %69 : vector<16x256xf32>
    %c0_44 = arith.constant 0 : index
    %c143 = arith.constant 143 : index
    %71 = vector.load %arg18[%c0_44, %c143] : memref<16x512xf32, #tpu.memory_space<vmem>>, vector<16x256xf32>
    %c6 = arith.constant 6 : index
    %c0_45 = arith.constant 0 : index
    %c0_46 = arith.constant 0 : index
    %72 = vector.load %arg3[%c6, %c0_45, %c0_46] : memref<9x16x1xf32, #tpu.memory_space<vmem>>, vector<1x16x1xf32>
    %73 = vector.shape_cast %72 : vector<1x16x1xf32> to vector<16x1xf32>
    %c6_47 = arith.constant 6 : index
    %c0_48 = arith.constant 0 : index
    %74 = vector.load %arg4[%c6_47, %c0_48] : memref<9x256xf32, #tpu.memory_space<vmem>>, vector<1x256xf32>
    %75 = vector.broadcast %74 : vector<1x256xf32> to vector<16x256xf32>
    %76 = arith.mulf %75, %71 : vector<16x256xf32>
    %77 = vector.broadcast %73 : vector<16x1xf32> to vector<16x256xf32>
    %78 = arith.mulf %77, %76 : vector<16x256xf32>
    %79 = arith.addf %70, %78 : vector<16x256xf32>
    %c0_49 = arith.constant 0 : index
    %c144 = arith.constant 144 : index
    %80 = vector.load %arg18[%c0_49, %c144] : memref<16x512xf32, #tpu.memory_space<vmem>>, vector<16x256xf32>
    %c7 = arith.constant 7 : index
    %c0_50 = arith.constant 0 : index
    %c0_51 = arith.constant 0 : index
    %81 = vector.load %arg3[%c7, %c0_50, %c0_51] : memref<9x16x1xf32, #tpu.memory_space<vmem>>, vector<1x16x1xf32>
    %82 = vector.shape_cast %81 : vector<1x16x1xf32> to vector<16x1xf32>
    %c7_52 = arith.constant 7 : index
    %c0_53 = arith.constant 0 : index
    %83 = vector.load %arg4[%c7_52, %c0_53] : memref<9x256xf32, #tpu.memory_space<vmem>>, vector<1x256xf32>
    %84 = vector.broadcast %83 : vector<1x256xf32> to vector<16x256xf32>
    %85 = arith.mulf %84, %80 : vector<16x256xf32>
    %86 = vector.broadcast %82 : vector<16x1xf32> to vector<16x256xf32>
    %87 = arith.mulf %86, %85 : vector<16x256xf32>
    %88 = arith.addf %79, %87 : vector<16x256xf32>
    %c0_54 = arith.constant 0 : index
    %c145 = arith.constant 145 : index
    %89 = vector.load %arg18[%c0_54, %c145] : memref<16x512xf32, #tpu.memory_space<vmem>>, vector<16x256xf32>
    %c8 = arith.constant 8 : index
    %c0_55 = arith.constant 0 : index
    %c0_56 = arith.constant 0 : index
    %90 = vector.load %arg3[%c8, %c0_55, %c0_56] : memref<9x16x1xf32, #tpu.memory_space<vmem>>, vector<1x16x1xf32>
    %91 = vector.shape_cast %90 : vector<1x16x1xf32> to vector<16x1xf32>
    %c8_57 = arith.constant 8 : index
    %c0_58 = arith.constant 0 : index
    %92 = vector.load %arg4[%c8_57, %c0_58] : memref<9x256xf32, #tpu.memory_space<vmem>>, vector<1x256xf32>
    %93 = vector.broadcast %92 : vector<1x256xf32> to vector<16x256xf32>
    %94 = arith.mulf %93, %89 : vector<16x256xf32>
    %95 = vector.broadcast %91 : vector<16x1xf32> to vector<16x256xf32>
    %96 = arith.mulf %95, %94 : vector<16x256xf32>
    %97 = arith.addf %88, %96 : vector<16x256xf32>
    %c0_59 = arith.constant 0 : index
    %c0_60 = arith.constant 0 : index
    %98 = vector.load %arg11[%c0_59, %c0_60] : memref<16x1xf32, #tpu.memory_space<vmem>>, vector<16x1xf32>
    %c0_61 = arith.constant 0 : index
    %c0_62 = arith.constant 0 : index
    %99 = vector.load %arg12[%c0_61, %c0_62] : memref<16x1xf32, #tpu.memory_space<vmem>>, vector<16x1xf32>
    %100 = vector.broadcast %98 : vector<16x1xf32> to vector<16x256xf32>
    %101 = arith.mulf %97, %100 : vector<16x256xf32>
    %102 = vector.broadcast %99 : vector<16x1xf32> to vector<16x256xf32>
    %103 = arith.addf %101, %102 : vector<16x256xf32>
    %cst_63 = arith.constant 0.000000e+00 : f32
    %104 = vector.broadcast %cst_63 : f32 to vector<16x256xf32>
    %105 = arith.subf %104, %103 : vector<16x256xf32>
    %106 = math.exp %105 : vector<16x256xf32>
    %cst_64 = arith.constant 1.000000e+00 : f32
    %107 = vector.broadcast %cst_64 : f32 to vector<16x256xf32>
    %108 = arith.addf %107, %106 : vector<16x256xf32>
    %109 = tpu.reciprocal %108 {approx = true} : vector<16x256xf32> -> vector<16x256xf32>
    %110 = arith.mulf %103, %109 : vector<16x256xf32>
    %cst_65 = arith.constant dense<0.000000e+00> : vector<16xf32>
    %111 = vector.multi_reduction <add>, %110, %cst_65 [1] : vector<16x256xf32> to vector<16xf32>
    %112 = vector.shape_cast %111 : vector<16xf32> to vector<16x1xf32>
    %cst_66 = arith.constant 2.560000e+02 : f32
    %113 = vector.broadcast %cst_66 : f32 to vector<16x1xf32>
    %114 = arith.divf %112, %113 : vector<16x1xf32>
    %c0_67 = arith.constant 0 : index
    %c0_68 = arith.constant 0 : index
    %115 = vector.load %arg5[%c0_67, %c0_68] : memref<8x16xf32, #tpu.memory_space<vmem>>, vector<8x16xf32>
    %cst_69 = arith.constant dense<0.000000e+00> : vector<8x1xf32>
    %116 = tpu.matmul %115, %114, %cst_69 {dimension_numbers = #tpu.dot_dimension_numbers<[1], [0], [0], [1], [0, 0, 1, 1], [], []>} : vector<8x16xf32>, vector<16x1xf32>, vector<8x1xf32> -> vector<8x1xf32>
    %c0_70 = arith.constant 0 : index
    %c0_71 = arith.constant 0 : index
    %117 = vector.load %arg6[%c0_70, %c0_71] : memref<8x1xf32, #tpu.memory_space<vmem>>, vector<8x1xf32>
    %118 = arith.addf %116, %117 : vector<8x1xf32>
    %cst_72 = arith.constant 0.000000e+00 : f32
    %119 = vector.broadcast %cst_72 : f32 to vector<8x1xf32>
    %120 = arith.maximumf %118, %119 : vector<8x1xf32>
    %c0_73 = arith.constant 0 : index
    %c0_74 = arith.constant 0 : index
    %121 = vector.load %arg7[%c0_73, %c0_74] : memref<16x8xf32, #tpu.memory_space<vmem>>, vector<16x8xf32>
    %cst_75 = arith.constant dense<0.000000e+00> : vector<16x1xf32>
    %122 = tpu.matmul %121, %120, %cst_75 {dimension_numbers = #tpu.dot_dimension_numbers<[1], [0], [0], [1], [0, 0, 1, 1], [], []>} : vector<16x8xf32>, vector<8x1xf32>, vector<16x1xf32> -> vector<16x1xf32>
    %c0_76 = arith.constant 0 : index
    %c0_77 = arith.constant 0 : index
    %123 = vector.load %arg8[%c0_76, %c0_77] : memref<16x1xf32, #tpu.memory_space<vmem>>, vector<16x1xf32>
    %124 = arith.addf %122, %123 : vector<16x1xf32>
    %cst_78 = arith.constant 0.000000e+00 : f32
    %125 = vector.broadcast %cst_78 : f32 to vector<16x1xf32>
    %126 = arith.subf %125, %124 : vector<16x1xf32>
    %127 = math.exp %126 : vector<16x1xf32>
    %cst_79 = arith.constant 1.000000e+00 : f32
    %128 = vector.broadcast %cst_79 : f32 to vector<16x1xf32>
    %129 = arith.addf %128, %127 : vector<16x1xf32>
    %130 = tpu.reciprocal %129 {approx = true} : vector<16x1xf32> -> vector<16x1xf32>
    %131 = vector.broadcast %130 : vector<16x1xf32> to vector<16x256xf32>
    %132 = arith.mulf %110, %131 : vector<16x256xf32>
    %133 = tpu.concatenate %132, %16 in 0 : vector<16x256xf32>, vector<16x256xf32> -> vector<32x256xf32>
    %c0_80 = arith.constant 0 : index
    %c0_81 = arith.constant 0 : index
    %134 = vector.load %arg9[%c0_80, %c0_81] : memref<32x32xf32, #tpu.memory_space<vmem>>, vector<32x32xf32>
    %cst_82 = arith.constant dense<0.000000e+00> : vector<32x256xf32>
    %135 = tpu.matmul %134, %133, %cst_82 {dimension_numbers = #tpu.dot_dimension_numbers<[1], [0], [0], [1], [0, 0, 1, 1], [], []>} : vector<32x32xf32>, vector<32x256xf32>, vector<32x256xf32> -> vector<32x256xf32>
    %c0_83 = arith.constant 0 : index
    %c0_84 = arith.constant 0 : index
    %136 = vector.load %arg13[%c0_83, %c0_84] : memref<32x1xf32, #tpu.memory_space<vmem>>, vector<32x1xf32>
    %c0_85 = arith.constant 0 : index
    %c0_86 = arith.constant 0 : index
    %137 = vector.load %arg14[%c0_85, %c0_86] : memref<32x1xf32, #tpu.memory_space<vmem>>, vector<32x1xf32>
    %138 = vector.broadcast %136 : vector<32x1xf32> to vector<32x256xf32>
    %139 = arith.mulf %135, %138 : vector<32x256xf32>
    %140 = vector.broadcast %137 : vector<32x1xf32> to vector<32x256xf32>
    %141 = arith.addf %139, %140 : vector<32x256xf32>
    %cst_87 = arith.constant 0.000000e+00 : f32
    %142 = vector.broadcast %cst_87 : f32 to vector<32x256xf32>
    %143 = arith.subf %142, %141 : vector<32x256xf32>
    %144 = math.exp %143 : vector<32x256xf32>
    %cst_88 = arith.constant 1.000000e+00 : f32
    %145 = vector.broadcast %cst_88 : f32 to vector<32x256xf32>
    %146 = arith.addf %145, %144 : vector<32x256xf32>
    %147 = tpu.reciprocal %146 {approx = true} : vector<32x256xf32> -> vector<32x256xf32>
    %148 = arith.mulf %141, %147 : vector<32x256xf32>
    %c0_89 = arith.constant 0 : index
    %c0_90 = arith.constant 0 : index
    %149 = vector.load %arg10[%c0_89, %c0_90] : memref<32x32xf32, #tpu.memory_space<vmem>>, vector<32x32xf32>
    %cst_91 = arith.constant dense<0.000000e+00> : vector<32x256xf32>
    %150 = tpu.matmul %149, %148, %cst_91 {dimension_numbers = #tpu.dot_dimension_numbers<[1], [0], [0], [1], [0, 0, 1, 1], [], []>} : vector<32x32xf32>, vector<32x256xf32>, vector<32x256xf32> -> vector<32x256xf32>
    %c0_92 = arith.constant 0 : index
    %c0_93 = arith.constant 0 : index
    %151 = vector.load %arg15[%c0_92, %c0_93] : memref<32x1xf32, #tpu.memory_space<vmem>>, vector<32x1xf32>
    %152 = vector.broadcast %151 : vector<32x1xf32> to vector<32x256xf32>
    %153 = arith.mulf %150, %152 : vector<32x256xf32>
    %c0_94 = arith.constant 0 : index
    %c0_95 = arith.constant 0 : index
    %154 = vector.load %arg16[%c0_94, %c0_95] : memref<32x1xf32, #tpu.memory_space<vmem>>, vector<32x1xf32>
    %155 = vector.broadcast %154 : vector<32x1xf32> to vector<32x256xf32>
    %156 = arith.addf %153, %155 : vector<32x256xf32>
    %cst_96 = arith.constant 0.000000e+00 : f32
    %157 = vector.broadcast %cst_96 : f32 to vector<32x256xf32>
    %158 = arith.subf %157, %156 : vector<32x256xf32>
    %159 = math.exp %158 : vector<32x256xf32>
    %cst_97 = arith.constant 1.000000e+00 : f32
    %160 = vector.broadcast %cst_97 : f32 to vector<32x256xf32>
    %161 = arith.addf %160, %159 : vector<32x256xf32>
    %162 = tpu.reciprocal %161 {approx = true} : vector<32x256xf32> -> vector<32x256xf32>
    %163 = arith.mulf %156, %162 : vector<32x256xf32>
    %c0_98 = arith.constant 0 : index
    %c0_99 = arith.constant 0 : index
    %c0_100 = arith.constant 0 : index
    %164 = vector.load %arg17[%c0_98, %c0_99, %c0_100] : memref<1x32x256xf32, #tpu.memory_space<vmem>>, vector<1x32x256xf32>
    %165 = vector.shape_cast %164 : vector<1x32x256xf32> to vector<32x256xf32>
    %166 = vector.shape_cast %163 : vector<32x256xf32> to vector<1x32x256xf32>
    tpu.vector_store %arg17[%c0_98, %c0_99, %c0_100], %166 {strides = array<i32>} : memref<1x32x256xf32, #tpu.memory_space<vmem>>, vector<1x32x256xf32>,
    return
  }
  func.func @transform_0(%arg0: i32) -> (i32, i32, i32) {
    %c0_i32 = arith.constant 0 : i32
    %c0_i32_0 = arith.constant 0 : i32
    %c0_i32_1 = arith.constant 0 : i32
    return %arg0, %c0_i32, %c0_i32_0 : i32, i32, i32
  }
  func.func @transform_1(%arg0: i32) -> (i32, i32) {
    %c0_i32 = arith.constant 0 : i32
    %c0_i32_0 = arith.constant 0 : i32
    %c0_i32_1 = arith.constant 0 : i32
    return %c0_i32, %c0_i32_0 : i32, i32
  }
  func.func @transform_2(%arg0: i32) -> (i32, i32, i32) {
    %c0_i32 = arith.constant 0 : i32
    %c0_i32_0 = arith.constant 0 : i32
    %c0_i32_1 = arith.constant 0 : i32
    %c0_i32_2 = arith.constant 0 : i32
    return %c0_i32, %c0_i32_0, %c0_i32_1 : i32, i32, i32
  }
  func.func @transform_3(%arg0: i32) -> (i32, i32) {
    %c0_i32 = arith.constant 0 : i32
    %c0_i32_0 = arith.constant 0 : i32
    %c0_i32_1 = arith.constant 0 : i32
    return %c0_i32, %c0_i32_0 : i32, i32
  }
  func.func @transform_4(%arg0: i32) -> (i32, i32) {
    %c0_i32 = arith.constant 0 : i32
    %c0_i32_0 = arith.constant 0 : i32
    %c0_i32_1 = arith.constant 0 : i32
    return %c0_i32, %c0_i32_0 : i32, i32
  }
  func.func @transform_5(%arg0: i32) -> (i32, i32) {
    %c0_i32 = arith.constant 0 : i32
    %c0_i32_0 = arith.constant 0 : i32
    %c0_i32_1 = arith.constant 0 : i32
    return %c0_i32, %c0_i32_0 : i32, i32
  }
  func.func @transform_6(%arg0: i32) -> (i32, i32) {
    %c0_i32 = arith.constant 0 : i32
    %c0_i32_0 = arith.constant 0 : i32
    %c0_i32_1 = arith.constant 0 : i32
    return %c0_i32, %c0_i32_0 : i32, i32
  }
  func.func @transform_7(%arg0: i32) -> (i32, i32) {
    %c0_i32 = arith.constant 0 : i32
    %c0_i32_0 = arith.constant 0 : i32
    %c0_i32_1 = arith.constant 0 : i32
    return %c0_i32, %c0_i32_0 : i32, i32
  }
  func.func @transform_8(%arg0: i32) -> (i32, i32) {
    %c0_i32 = arith.constant 0 : i32
    %c0_i32_0 = arith.constant 0 : i32
    %c0_i32_1 = arith.constant 0 : i32
    return %c0_i32, %c0_i32_0 : i32, i32
  }
  func.func @transform_9(%arg0: i32) -> (i32, i32) {
    %c0_i32 = arith.constant 0 : i32
    %c0_i32_0 = arith.constant 0 : i32
    %c0_i32_1 = arith.constant 0 : i32
    return %c0_i32, %c0_i32_0 : i32, i32
  }
  func.func @transform_10(%arg0: i32) -> (i32, i32) {
    %c0_i32 = arith.constant 0 : i32
    %c0_i32_0 = arith.constant 0 : i32
    %c0_i32_1 = arith.constant 0 : i32
    return %c0_i32, %c0_i32_0 : i32, i32
  }
  func.func @transform_11(%arg0: i32) -> (i32, i32) {
    %c0_i32 = arith.constant 0 : i32
    %c0_i32_0 = arith.constant 0 : i32
    %c0_i32_1 = arith.constant 0 : i32
    return %c0_i32, %c0_i32_0 : i32, i32
  }
  func.func @transform_12(%arg0: i32) -> (i32, i32) {
    %c0_i32 = arith.constant 0 : i32
    %c0_i32_0 = arith.constant 0 : i32
    %c0_i32_1 = arith.constant 0 : i32
    return %c0_i32, %c0_i32_0 : i32, i32
  }
  func.func @transform_13(%arg0: i32) -> (i32, i32) {
    %c0_i32 = arith.constant 0 : i32
    %c0_i32_0 = arith.constant 0 : i32
    %c0_i32_1 = arith.constant 0 : i32
    return %c0_i32, %c0_i32_0 : i32, i32
  }
  func.func @transform_14(%arg0: i32) -> (i32, i32) {
    %c0_i32 = arith.constant 0 : i32
    %c0_i32_0 = arith.constant 0 : i32
    %c0_i32_1 = arith.constant 0 : i32
    return %c0_i32, %c0_i32_0 : i32, i32
  }
  func.func @transform_15(%arg0: i32) -> (i32, i32) {
    %c0_i32 = arith.constant 0 : i32
    %c0_i32_0 = arith.constant 0 : i32
    %c0_i32_1 = arith.constant 0 : i32
    return %c0_i32, %c0_i32_0 : i32, i32
  }
  func.func @transform_16(%arg0: i32) -> (i32, i32, i32) {
    %c0_i32 = arith.constant 0 : i32
    %c0_i32_0 = arith.constant 0 : i32
    %c0_i32_1 = arith.constant 0 : i32
    return %arg0, %c0_i32, %c0_i32_0 : i32, i32, i32
  }
}

</mosaic_0001>

<bundles_post_ra>
// kernel: tpu_custom_call.1
= control target key start
LH: loop header
LB: loop body
LE: loop exit
PB: predicated region body
PF: predicated region fallthrough
CT: control target
= control target key end

     0   :  { %s3096_s0 = inlined_call_operand.vmem [shape: f32[2,32,256], index: 0, kind: input, shape index: {}]   ;;  %s3097_s1 = inlined_call_operand.vmem [shape: f32[16,32], index: 1, kind: input, shape index: {}]   ;;  %s3098_s2 = inlined_call_operand.vmem [shape: f32[9,16,1], index: 2, kind: input, shape index: {}]   ;;  %s3099_s3 = inlined_call_operand.vmem [shape: f32[9,256], index: 3, kind: input, shape index: {}]   ;;  %s3100_s4 = inlined_call_operand.vmem [shape: f32[8,16], index: 4, kind: input, shape index: {}]   ;;  %s3101_s5 = inlined_call_operand.vmem [shape: f32[8,1], index: 5, kind: input, shape index: {}]   ;;  %s3102_s6 = inlined_call_operand.vmem [shape: f32[16,8], index: 6, kind: input, shape index: {}]   ;;  %s3103_s7 = inlined_call_operand.vmem [shape: f32[16,1], index: 7, kind: input, shape index: {}]   ;;  %s3104_s8 = inlined_call_operand.vmem [shape: f32[32,32], index: 8, kind: input, shape index: {}]   ;;  %s3105_s9 = inlined_call_operand.vmem [shape: f32[32,32], index: 9, kind: input, shape index: {}]   ;;  %s3106_s10 = inlined_call_operand.vmem [shape: f32[16,1], index: 10, kind: input, shape index: {}]   ;;  %s3107_s11 = inlined_call_operand.vmem [shape: f32[16,1], index: 11, kind: input, shape index: {}]   ;;  %s3108_s12 = inlined_call_operand.vmem [shape: f32[32,1], index: 12, kind: input, shape index: {}]   ;;  %s3109_s13 = inlined_call_operand.vmem [shape: f32[32,1], index: 13, kind: input, shape index: {}]   ;;  %s3110_s14 = inlined_call_operand.vmem [shape: f32[32,1], index: 14, kind: input, shape index: {}]   ;;  %s3111_s15 = inlined_call_operand.vmem [shape: f32[32,1], index: 15, kind: input, shape index: {}]   ;;  %s3112_s16 = inlined_call_operand.hbm [shape: f32[2,32,256], index: 16, kind: output, shape index: {}]  }
   0x1   :  { %3133 = sst [smem:[#allocation13_spill]] %s3096_s0 }
   0x2   :  { %3134 = sst [smem:[#allocation14_spill]] %s3097_s1 }
   0x3   :  { %21 = vsyncpa [#allocation4], 0 }
   0x4   :  { %23 = vsyncpa [#allocation4 + $0x1], 0  ;;  %s2383_s21 = smov 0   ;;  %s2385_s22 = smov 0  }
   0x5   :  { %s2387_s23 = smov 0   ;;  %s2389_s24 = smov 0  }
   0x6 LB: > { %3135 = sst [smem:[#allocation6_spill]] %s2279_s23  ;;  %s2404_s25 = sadd.s32 4294967295, %s2283_s24   ;;  %s2283_s24 = sphi %s2389_s24, %s3158_s24   ;;  %s2279_s23 = sphi %s2387_s23, %s3160_s23   ;;  %s2275_s22 = sphi %s2385_s22, %s3162_s22   ;;  %s2271_s21 = sphi %s2383_s21, %s3161_s21  }
   0x7   : > { %s1958_s26 = sadd.s32 4294967294, %s2283_s24   ;;  %s2408_s27 = sadd.s32 1, %s2283_s24  }
   0x8   : > { %3136 = sst [smem:[#allocation7_spill]] %s2408_s27  ;;  %s377_s28 = sadd.s32 1, %s2279_s23 }
   0x9   : > { %s374_s29 = ssub.s32 %s2283_s24, %s2408_s27  ;;  %p387_p0 = scmp.ne.s32.totalorder %s2279_s23, %s2275_s22 }
   0xa   : > { %p375_p1 = scmp.eq.s32.totalorder %s374_s29, 0  ;;  %p388_p2 = scmp.eq.s32.totalorder %s2404_s25, 1 }
   0xb   : > { %p393_p3 = scmp.ne.s32.totalorder %s2275_s22, %s2271_s21  ;;  %p394_p4 = scmp.eq.s32.totalorder %s1958_s26, 1 }
   0xc   : > { %s2419_s30 = scalar_select %p375_p1, %s2279_s23, %s377_s28  }
   0xd   : > { %p2421_p5 = por %p388_p2, %p387_p0  ;;  %p2425_p6 = por %p394_p4, %p393_p3 }
   0xe   : > { %3137 = sst [smem:[#allocation8_spill]] %s2419_s30  ;;  %p1961_p7 = scmp.ge.s32.totalorder %s2283_s24, 1 }
   0xf   : > { %s3139_s17 = scalar_select %p2425_p6, 1, 0 }
  0x10   : > { %p465_p8 = scmp.lt.s32.totalorder %s2283_s24, 3 }
  0x11   : > { %3140 = sst [smem:[#allocation9_spill]] %s3139_s17 }
  0x12   : > { %p466_p9 = pnand %p1961_p7, %p465_p8 }
  0x14   : > { %469 = sbr.rel (%p466_p9) target bundleno = 1724 (0x6bc), region = 84 }
  0x19   : > { %p515_p10 = scmp.lt.s32.totalorder %s2404_s25, 1  ;;  %v3127_v0 = vmov 0.0   ;;  %v2286_v1 = vmov 0   ;;  %v2436_v2 = vld [vmem:[%s3107_s11 + $0x8] sm:$0xff]  ;;  %v2449_v4 = vld [vmem:[%s3107_s11] sm:$0xff]  ;;  %s3141_s27 = sld [smem:[#allocation13_spill]] }
  0x1a   : > { %601 = vmatprep.mubr.f32.mxu0 %v3127_v0  ;;  %2078 = vset.pattern.permute.xlu1 %v2286_v1  ;;  %v2441_v3 = vld [vmem:[%s3106_s10 + $0x8] sm:$0xff]  ;;  %v2455_v5 = vld [vmem:[%s3106_s10] sm:$0xff]  ;;  %s3142_s1 = sld [smem:[#allocation14_spill]]  ;;  %vm530_vm0 = vcmask 261120   ;;  %s3117_s26 = smov 17   ;;  %v1970_v18 = vld [vmem:[%s3098_s2 + $0x18] sm:$0xff] }
  0x1b   : > { %s516_s28 = scalar_select %p515_p10, %s2404_s25, 1  ;;  %639 = vperm.xlu1 %2078, %v2436_v2   ;;  %2077 = vset.pattern.permute.xlu0 %v2286_v1  ;;  %v702_v10 = vld [vmem:[%s3098_s2 + $0x8] sm:$0xff]  ;;  %v1967_v17 = vld [vmem:[%s3098_s2 + $0x40] sm:$0xff]  ;;  %v1969_v21 = vld [vmem:[%s3098_s2 + $0x10] sm:$0xff]  ;;  %vm792_vm1 = vcmask 130048   ;;  %vm733_vm2 = vcmask 138240  }
  0x1c   : > { %625 = vperm.xlu0 %2077, %v2441_v3   ;;  %2014 = vmatprep.subr.mxu1 %v3127_v0  ;;  %v1968_v12 = vld [vmem:[%s3098_s2 + $0x48] sm:$0xff]  ;;  %v701_v20 = vld [vmem:[%s3098_s2] sm:$0xff]  ;;  %s3132_s20 = smov 16   ;;  %v1976_v23 = vld [vmem:[%s3098_s2 + $0x38] sm:$0xff]  ;;  %s3123_s23 = smov 127   ;;  %vm910_vm3 = vcmask 7168  }
  0x1d   : > { %s2006_s18 = sshll.u32 %s516_s28, 6  ;;  %v1973_v22 = vld [vmem:[%s3098_s2 + $0x28] sm:$0xff]  ;;  %s3119_s28 = smov 15   ;;  %v1972_v24 = vld [vmem:[%s3098_s2 + $0x20] sm:$0xff]  ;;  %v1975_v25 = vld [vmem:[%s3098_s2 + $0x30] sm:$0xff]  ;;  %vm851_vm4 = vcmask 121856  }
  0x1e   : > { %v1979_v26 = vld [vmem:[%s3098_s2 + $0x58] sm:$0xff]  ;;  %v1982_v27 = vld [vmem:[%s3098_s2 + $0x68] sm:$0xff]  ;;  %v1978_v28 = vld [vmem:[%s3098_s2 + $0x50] sm:$0xff]  ;;  %s2293_s29 = smov 112   ;;  %s3144_s30 = smov 1   ;;  %vm981_vm5 = vcmask 1039360  }
  0x1f   : > { %s519_s17 = scalar_lea.vmem %s3141_s27, %s2006_s18  ;;  %634 = vperm.xlu1 %2078, %v2449_v4   ;;  %v1981_v29 = vld [vmem:[%s3098_s2 + $0x60] sm:$0xff]  ;;  %v1985_v30 = vld [vmem:[%s3098_s2 + $0x78] sm:$0xff]  ;;  %v1988_v31 = vld [vmem:[%s3098_s2 + $0x88] sm:$0xff]  ;;  %s3145_s27 = smov 15   ;;  %vm1099_vm6 = vcmask 916480   ;;  %vm1040_vm7 = vcmask 924672  }
  0x20   : > { %v527_v6 = vld [vmem:[%s519_s17 + $0x38] sm:$0xff]  ;;  %v526_v7 = vld [vmem:[%s519_s17 + $0x30] sm:$0xff]  ;;  %v525_v8 = vld [vmem:[%s519_s17 + $0x28] sm:$0xff]  ;;  %620 = vperm.xlu0 %2077, %v2455_v5   ;;  %vm1158_vm8 = vcmask 908288   ;;  %vm2295_vm9 = vmmov 0   ;;  %vm1334_vm10 = vcmask 64512  }
  0x21   : > { %561 = vmatprep.subr.mxu0 %v527_v6  ;;  %v524_v9 = vld [vmem:[%s519_s17 + $0x20] sm:$0xff]  ;;  %v523_v11 = vld [vmem:[%s519_s17 + $0x18] sm:$0xff]  ;;  %v522_v13 = vld [vmem:[%s519_s17 + $0x10] sm:$0xff]  ;;  %s2007_s19 = sshll.u32 %s2404_s25, 10 }
  0x22   : > { %562 = vmatpush1.msra.mxu0 %v526_v7  ;;  %v521_v14 = vld [vmem:[%s519_s17 + $0x8] sm:$0xff]  ;;  %v520_v15 = vld [vmem:[%s519_s17] sm:$0xff]  ;;  %s3121_s17 = smov 1   ;;  %v1984_v32 = vld [vmem:[%s3098_s2 + $0x70] sm:$0xff] }
  0x23   : > { %563 = vmatprep.subr.mxu0 %v525_v8  ;;  %753 = vperm.xlu1 %2078, %v702_v10   ;;  %v528_v16 = vld [vmem:[%s3142_s1] sm:$0xff]  ;;  %v529_v19 = vld [vmem:[%s3142_s1 + $0x8] sm:$0xff] }
  0x24   : > { %564 = vmatpush1.msra.mxu0 %v524_v9  ;;  %688 = vperm.xlu0 %2077, %v1968_v12   ;;  %v1987_v33 = vld [vmem:[%s3098_s2 + $0x80] sm:$0xff] }
  0x25   : > { %565 = vmatprep.subr.mxu0 %v523_v11 }
  0x26   : > { %566 = vmatpush1.msra.mxu0 %v522_v13 }
  0x27   : > { %567 = vmatprep.subr.mxu0 %v521_v14  ;;  %2080 = vrot.lane.b32.xlu1 %v3127_v0, %s3117_s26  ;;  %s3146_s26 = smov 113  }
  0x28   : > { %568 = vmatpush1.msra.mxu0 %v520_v15  ;;  %683 = vperm.xlu0 %2077, %v1967_v17  }
  0x29   : > { %1965 = vmatmul.mubr.msk.f32.vlgmr.msra.gmra.mxu0 %vm530_vm0, %v528_v16 }
  0x2a   : > { %607 = vmatprep.mubr.f32.mxu0 %v3127_v0 }
  0x2b   : > { %812 = vperm.xlu1 %2078, %v1970_v18  }
  0x2c   : > { %748 = vperm.xlu0 %2077, %v701_v20  }
  0x2d   : > { %1966 = vmatmul.mubr.msk.f32.gmra.mxu0 %vm530_vm0, %v529_v19 }
  0x2e   : > { %1520 = vmatprep.mubr.f32.mxu0 %v3127_v0 }
  0x2f   : > { %807 = vperm.xlu1 %2078, %v1969_v21  }
  0x30   : > { %2085 = vrot.lane.b32.xlu0 %v3127_v0, %s3132_s20 }
  0x33   : > { %2090 = vrot.lane.b32.xlu1 %v3127_v0, %s3119_s28  ;;  %s3125_s28 = smov 113  }
  0x34   : > { %871 = vperm.xlu0 %2077, %v1973_v22  }
  0x37   : > { %930 = vperm.xlu1 %2078, %v1976_v23  }
  0x38   : > { %866 = vperm.xlu0 %2077, %v1972_v24  }
  0x3b   : > { %925 = vperm.xlu1 %2078, %v1975_v25  }
  0x3c   : > { %2095 = vrot.lane.b32.xlu0 %v3127_v0, %s3121_s17  ;;  %s3147_s17 = smov 127  }
  0x3f   : > { %2100 = vrot.lane.b32.xlu1 %v3127_v0, %s3123_s23  ;;  %s2294_s23 = smov 111  }
  0x40   : > { %1001 = vperm.xlu0 %2077, %v1979_v26  }
  0x43   : > { %1060 = vperm.xlu1 %2078, %v1982_v27  }
  0x44   : > { %996 = vperm.xlu0 %2077, %v1978_v28  }
  0x47   : > { %1055 = vperm.xlu1 %2078, %v1981_v29  }
  0x48   : > { %2105 = vrot.lane.b32.xlu0 %v3127_v0, %s3125_s28  ;;  %s3143_s28 = smov 17  }
  0x4b   : > { %2110 = vrot.lane.b32.xlu1 %v3127_v0, %s2293_s29 }
  0x4c   : > { %1119 = vperm.xlu0 %2077, %v1985_v30  }
  0x4f   : > { %1178 = vperm.xlu1 %2078, %v1988_v31  }
  0x50   : > { %1114 = vperm.xlu0 %2077, %v1984_v32  }
  0x53   : > { %1173 = vperm.xlu1 %2078, %v1987_v33  }
  0x54   : > { %2115 = vrot.lane.b32.xlu0 %v3127_v0, %s2294_s23 }
  0x96   : > { %v640_v35 = vpop.permute.xlu1 %639 }
  0x97   : > { %v626_v34 = vpop.permute.xlu0 %625 }
  0x9a   : > { %v635_v39 = vpop.permute.xlu1 %634 }
  0x9b   : > { %v621_v36 = vpop.permute.xlu0 %620 }
  0x9e   : > { %v2594_v15 = vpop.permute.xlu1 %753 }
  0x9f   : > { %v2596_v16 = vpop.permute.xlu0 %688 }
  0xa2   : > { %v2602_v17 = vpop.permute.xlu1 %2080 }
  0xa3   : > { %v2604_v18 = vpop.permute.xlu0 %683 }
  0xa6   : > { %v2614_v19 = vpop.permute.xlu1 %812 }
  0xa7   : > { %v2616_v20 = vpop.permute.xlu0 %748 }
  0xaa   : > { %v2622_v21 = vpop.permute.xlu1 %807 }
  0xab   : > { %v2624_v22 = vpop.permute.xlu0 %2085 }
  0xae   : > { %v2634_v23 = vpop.permute.xlu1 %2090 }
  0xaf   : > { %v2636_v24 = vpop.permute.xlu0 %871 }
  0xb2   : > { %v2640_v25 = vpop.permute.xlu1 %930 }
  0xb3   : > { %v2642_v26 = vpop.permute.xlu0 %866 }
  0xb6   : > { %v2646_v27 = vpop.permute.xlu1 %925 }
  0xb7   : > { %v2648_v28 = vpop.permute.xlu0 %2095 }
  0xba   : > { %v2650_v29 = vpop.permute.xlu1 %2100 }
  0xbb   : > { %v2652_v30 = vpop.permute.xlu0 %1001 }
  0xbe   : > { %v2654_v31 = vpop.permute.xlu1 %1060 }
  0xbf   : > { %3148 = vst [vmem:[#allocation10_spill] sm:$0xff] %v2654_v31 }
  0xe9   : > { %v603_v37 = vpop.f32.mrf.mxu0 }
  0xea   : > { %v628_v38 = vmul.f32 %v621_v36, %v603_v37 }
  0xeb   : > { %v605_v40 = vpop.f32.mrf.mxu0 }
  0xec   : > { %v642_v41 = vadd.f32 %v635_v39, %v628_v38  ;;  %v629_v42 = vmul.f32 %v621_v36, %v605_v40  ;;  %v703_v40 = vld [vmem:[%s3099_s3] ss:$8 sm:$0x3] }
  0xed   : > { %v609_v43 = vpop.f32.mrf.mxu0 }
  0xee   : > { %v646_v44 = vsub.f32 0.0, %v642_v41  ;;  %v643_v45 = vadd.f32 %v635_v39, %v629_v42  ;;  %v630_v46 = vmul.f32 %v626_v34, %v609_v43  ;;  %v1971_v39 = vld [vmem:[%s3099_s3 + $0x1] ss:$8 sm:$0x3] }
  0xef   : > { %v611_v47 = vpop.f32.mrf.mxu0 }
  0xf0   : > { %v650_v48 = vmul.f32 1.442695, %v646_v44  ;;  %v647_v49 = vsub.f32 0.0, %v643_v45  ;;  %v644_v50 = vadd.f32 %v640_v35, %v630_v46  ;;  %v631_v51 = vmul.f32 %v626_v34, %v611_v47  ;;  %v2691_v44 = vld [vmem:[%s3099_s3 + $0x3] ss:$8 sm:$0x3] }
  0xf1   : > { %v2088_v46 = vunpack.i.h.bf16 %v2624_v22  ;;  %v1974_v47 = vld [vmem:[%s3099_s3 + $0x2] ss:$8 sm:$0x3] }
  0xf2   : > { %2119 = vpow2.f32 %v650_v48  ;;  %v652_v52 = vmul.f32 1.442695, %v647_v49  ;;  %v648_v53 = vsub.f32 0.0, %v644_v50  ;;  %v645_v54 = vadd.f32 %v640_v35, %v631_v51 }
  0xf4   : > { %v654_v55 = vmul.f32 1.442695, %v648_v53  ;;  %v649_v56 = vsub.f32 0.0, %v645_v54  ;;  %2121 = vpow2.f32 %v652_v52 }
  0xf6   : > { %2123 = vpow2.f32 %v654_v55  ;;  %v656_v57 = vmul.f32 1.442695, %v649_v56  ;;  %v2093_v56 = vunpack.i.h.bf16 %v2634_v23 }
  0xf8   : > { %2125 = vpow2.f32 %v656_v57  ;;  %v2098_v57 = vunpack.i.h.bf16 %v2648_v28 }
  0xff   : > { %v2120_v58 = vpop.eup %2119 }
 0x100   : > { %v658_v59 = vadd.f32 1.0, %v2120_v58 }
 0x101   : > { %v2122_v60 = vpop.eup %2121 }
 0x102   : > { %2127 = vrcp.f32 %v658_v59  ;;  %v659_v1 = vadd.f32 1.0, %v2122_v60 }
 0x103   : > { %v2124_v61 = vpop.eup %2123 }
 0x104   : > { %v660_v62 = vadd.f32 1.0, %v2124_v61 }
 0x105   : > { %v2126_v63 = vpop.eup %2125 }
 0x106   : > { %v661_v6 = vadd.f32 1.0, %v2126_v63  ;;  %2129 = vrcp.f32 %v660_v62 }
 0x108   : > { %2131 = vrcp.f32 %v661_v6 }
 0x109   : > { %2133 = vrcp.f32 %v659_v1 }
 0x10f   : > { %v2128_v7 = vpop.eup %2127 }
 0x110   : > { %v2542_v8 = vmul.f32 %v2128_v7, %v642_v41 }
 0x112   : > { %782 = vrot.lane.b32.xlu1 %v2542_v8, %s3132_s20  ;;  %723 = vrot.lane.b32.xlu0 %v2542_v8, %s3143_s28  ;;  %v691_v58 = vmul.f32 %v2604_v18, %v2542_v8 }
 0x113   : > { %v2130_v9 = vpop.eup %2129 }
 0x114   : > { %v2554_v13 = vmul.f32 %v2130_v9, %v644_v50 }
 0x115   : > { %v2132_v10 = vpop.eup %2131 }
 0x116   : > { %v2134_v11 = vpop.eup %2133  ;;  %v2548_v12 = vmul.f32 %v2132_v10, %v645_v54  ;;  %900 = vrot.lane.b32.xlu1 %v2542_v8, %s3144_s30  ;;  %841 = vrot.lane.b32.xlu0 %v2542_v8, %s3145_s27 }
 0x117   : > { %v2557_v14 = vmul.f32 %v2134_v11, %v643_v45  ;;  %v2083_v45 = vunpack.i.h.bf16 %v2602_v17 }
 0x118   : > { %1480 = vmatprep.subr.mxu0 %v2548_v12 }
 0x119   : > { %1481 = vmatpush1.msra.mxu0 %v2554_v13 }
 0x11a   : > { %1028 = vrot.lane.b32.xlu1 %v2542_v8, %s3146_s26  ;;  %969 = vrot.lane.b32.xlu0 %v2542_v8, %s3147_s17 }
 0x11b   : > { %1482 = vmatprep.subr.mxu0 %v2557_v14 }
 0x11c   : > { %1483 = vmatpush1.msra.mxu0 %v2542_v8 }
 0x11e   : > { %1087 = vrot.lane.b32.xlu0 %v2542_v8, %s2293_s29  ;;  %725 = vrot.lane.b32.xlu1 %v2557_v14, %s3143_s28 }
 0x122   : > { %1146 = vrot.lane.b32.xlu0 %v2542_v8, %s2294_s23  ;;  %843 = vrot.lane.b32.xlu1 %v2557_v14, %s3145_s27 }
 0x126   : > { %784 = vrot.lane.b32.xlu0 %v2557_v14, %s3132_s20  ;;  %971 = vrot.lane.b32.xlu1 %v2557_v14, %s3147_s17 }
 0x12a   : > { %902 = vrot.lane.b32.xlu0 %v2557_v14, %s3144_s30  ;;  %1089 = vrot.lane.b32.xlu1 %v2557_v14, %s2293_s29 }
 0x12e   : > { %1030 = vrot.lane.b32.xlu0 %v2557_v14, %s3146_s26  ;;  %1148 = vrot.lane.b32.xlu1 %v2557_v14, %s2294_s23 }
 0x132   : > { %788 = vrot.lane.b32.xlu1 %v2554_v13, %s3132_s20  ;;  %729 = vrot.lane.b32.xlu0 %v2554_v13, %s3143_s28 }
 0x136   : > { %906 = vrot.lane.b32.xlu1 %v2554_v13, %s3144_s30  ;;  %847 = vrot.lane.b32.xlu0 %v2554_v13, %s3145_s27 }
 0x13a   : > { %975 = vrot.lane.b32.xlu1 %v2554_v13, %s3147_s17  ;;  %1034 = vrot.lane.b32.xlu0 %v2554_v13, %s3146_s26 }
 0x13e   : > { %1093 = vrot.lane.b32.xlu1 %v2554_v13, %s2293_s29  ;;  %1152 = vrot.lane.b32.xlu0 %v2554_v13, %s2294_s23 }
 0x142   : > { %790 = vrot.lane.b32.xlu0 %v2548_v12, %s3132_s20  ;;  %731 = vrot.lane.b32.xlu1 %v2548_v12, %s3143_s28  ;;  %s512_s20 = sand.u32 1, %s2275_s22  }
 0x143   : > { %s3055_s25 = scalar_lea.sflag [#allocation4], %s512_s20 }
 0x146   : > { %908 = vrot.lane.b32.xlu0 %v2548_v12, %s3144_s30  ;;  %849 = vrot.lane.b32.xlu1 %v2548_v12, %s3145_s27  ;;  %s3049_s27 = scalar_lea.hbm %s3112_s16, %s2007_s19 }
 0x14a   : > { %977 = vrot.lane.b32.xlu0 %v2548_v12, %s3147_s17  ;;  %1036 = vrot.lane.b32.xlu1 %v2548_v12, %s3146_s26  ;;  %s2296_s17 = smov [#allocation3]  }
 0x14e   : > { %1095 = vrot.lane.b32.xlu0 %v2548_v12, %s2293_s29  ;;  %1154 = vrot.lane.b32.xlu1 %v2548_v12, %s2294_s23  ;;  %s1962_s29 = sshll.u32 %s512_s20, 6 }
 0x14f   : > { %s514_s18 = scalar_lea.vmem [#allocation3], %s1962_s29  ;;  %s2227_s29 = sshll.u32 %s2296_s17, 4  ;;  %s2228_s29 = int_to_ptr.vmem [resolvable:$false] %s2227_s29 }
 0x150   : > { %s1896_s23 = sshll.u32 %s514_s18, 4  ;;  %s2229_s19 = scalar_lea.vmem %s2228_s29, 2048  ;;  %s3051_s23 = int_to_ptr.vmem [resolvable:$true] %s1896_s23 }
 0x151   : > { %s2223_s26 = scalar_lea.vmem %s3051_s23, 1024  ;;  %p2230_p0 = scmp.lt.s32.totalorder %s3051_s23, %s2228_s29 }
 0x152   : > { %1200 = vperm.xlu0 %2077, %v2441_v3   ;;  %1195 = vperm.xlu1 %2078, %v2455_v5   ;;  %v2656_v3 = vpop.permute.xlu0 %996  ;;  %v2658_v5 = vpop.permute.xlu1 %1055  ;;  %p2224_p11 = scmp.ne.s32.totalorder %s3051_s23, %s2223_s26  ;;  %p2231_p1 = scmp.lt.s32.totalorder %s2229_s19, %s2223_s26 }
 0x154   : > { %p2225_p12 = pnand %p2224_p11, %p2421_p5  ;;  %p2232_p2 = por %p2231_p1, %p2230_p0 }
 0x156   : > { %1214 = vperm.xlu0 %2077, %v2436_v2   ;;  %1209 = vperm.xlu1 %2078, %v2449_v4   ;;  %v2660_v32 = vpop.permute.xlu0 %2105  ;;  %v2662_v33 = vpop.permute.xlu1 %2110  ;;  %v705_v4 = vlaneseq  ;;  %p2226_p13 = pneg %p2225_p12 }
 0x158   : > { %v706_v36 = vshrl.u32 %v705_v4, 7  ;;  %p2233_p3 = pnand %p2232_p2, %p2226_p13 }
 0x15a   : > { %v2664_v2 = vpop.permute.xlu0 %1119  ;;  %v2666_v34 = vpop.permute.xlu1 %1178  ;;  %v2672_v38 = vsub.s32 0, %v706_v36 }
 0x15b   : > { %3149 = vst [vmem:[#allocation11_spill] sm:$0xff] %v2664_v2  ;;  %3150 = vst [vmem:[#allocation12_spill] sm:$0xff] %v2666_v34 }
 0x15c   : > { %v2683_v42 = vrot.slane %v1971_v39, %v2672_v38  ;;  %v2686_v43 = vrot.slane %v703_v40, %v2672_v38  ;;  %v2702_v52 = vrot.slane %v2691_v44, %v2672_v38  ;;  %v2707_v55 = vrot.slane %v1974_v47, %v2672_v38 }
 0x15e   : > { %v2668_v35 = vpop.permute.xlu0 %1114  ;;  %v2680_v41 = vpop.permute.xlu1 %1173 }
 0x162   : > { %v2670_v37 = vpop.permute.xlu0 %2115 }
 0x184   : > { %v783_v48 = vpop.permute.xlu1 %782  ;;  %v724_v49 = vpop.permute.xlu0 %723 }
 0x185   : > { %v793_v50 = vsel %vm792_vm1, %v2088_v46, %v783_v48  ;;  %v734_v51 = vsel %vm733_vm2, %v2083_v45, %v724_v49  ;;  %v711_v45 = vsub.s32 1, %v706_v36 }
 0x186   : > { %v801_v53 = vmul.f32 %v793_v50, %v2683_v42  ;;  %v742_v54 = vmul.f32 %v734_v51, %v2686_v43 }
 0x187   : > { %v2732_v36 = vrot.slane %v1974_v47, %v711_v45  ;;  %v2761_v0 = vrot.slane %v2691_v44, %v711_v45 }
 0x188   : > { %v756_v59 = vmul.f32 %v2616_v20, %v742_v54  ;;  %v901_v60 = vpop.permute.xlu1 %900  ;;  %v842_v61 = vpop.permute.xlu0 %841  ;;  %v815_v1 = vmul.f32 %v2622_v21, %v801_v53  ;;  %v2723_v54 = vrot.slane %v703_v40, %v711_v45 }
 0x189   : > { %v911_v62 = vsel %vm910_vm3, %v2098_v57, %v901_v60  ;;  %v852_v63 = vsel %vm851_vm4, %v2093_v56, %v842_v61 }
 0x18a   : > { %v760_v6 = vadd.f32 %v756_v59, %v691_v58  ;;  %v919_v7 = vmul.f32 %v911_v62, %v2702_v52  ;;  %v860_v9 = vmul.f32 %v852_v63, %v2707_v55  ;;  %v1980_v63 = vld [vmem:[%s3099_s3 + $0x5] ss:$8 sm:$0x3] }
 0x18c   : > { %v819_v10 = vadd.f32 %v815_v1, %v760_v6  ;;  %v874_v11 = vmul.f32 %v2642_v26, %v860_v9  ;;  %v2720_v4 = vpop.permute.xlu1 %1028  ;;  %v970_v8 = vpop.permute.xlu0 %969  ;;  %v933_v46 = vmul.f32 %v2646_v27, %v919_v7  ;;  %v2734_v1 = vrot.slane %v1971_v39, %v711_v45 }
 0x18d   : > { %v2103_v6 = vunpack.i.h.bf16 %v2650_v29  ;;  %v2108_v9 = vunpack.i.h.bf16 %v2660_v32 }
 0x18e   : > { %v878_v50 = vadd.f32 %v874_v11, %v819_v10  ;;  %v2113_v10 = vunpack.i.h.bf16 %v2662_v33 }
 0x190   : > { %v1088_v51 = vpop.permute.xlu0 %1087  ;;  %v726_v56 = vpop.permute.xlu1 %725  ;;  %v2725_v53 = vadd.f32 %v933_v46, %v878_v50  ;;  %v2745_v46 = vrot.slane %v1980_v63, %v711_v45  ;;  %v1986_v50 = vld [vmem:[%s3099_s3 + $0x7] ss:$8 sm:$0x3] }
 0x191   : > { %v735_v57 = vsel %vm733_vm2, %v724_v49, %v726_v56  ;;  %v2740_v49 = vrot.slane %v1980_v63, %v2672_v38  ;;  %v692_v56 = vmul.f32 %v2604_v18, %v2557_v14  ;;  %v2765_v34 = vrot.slane %v1986_v50, %v2672_v38 }
 0x192   : > { %v743_v58 = vmul.f32 %v735_v57, %v2723_v54  ;;  %v2767_v14 = vrot.slane %v1986_v50, %v711_v45 }
 0x194   : > { %v1147_v59 = vpop.permute.xlu0 %1146  ;;  %v844_v62 = vpop.permute.xlu1 %843  ;;  %v757_v11 = vmul.f32 %v2616_v20, %v743_v58 }
 0x195   : > { %v853_v7 = vsel %vm851_vm4, %v842_v61, %v844_v62  ;;  %v1983_v61 = vld [vmem:[%s3099_s3 + $0x6] ss:$8 sm:$0x3] }
 0x196   : > { %v861_v58 = vmul.f32 %v853_v7, %v2732_v36  ;;  %v2770_v18 = vrot.slane %v1983_v61, %v2672_v38  ;;  %v2774_v44 = vrot.slane %v1983_v61, %v711_v45  ;;  %v2118_v61 = vunpack.i.h.bf16 %v2670_v37 }
 0x198   : > { %v785_v47 = vpop.permute.xlu0 %784  ;;  %v972_v39 = vpop.permute.xlu1 %971 }
 0x199   : > { %v794_v57 = vsel %vm792_vm1, %v783_v48, %v785_v47  ;;  %v982_v62 = vsel %vm981_vm5, %v970_v8, %v972_v39  ;;  %v983_v20 = vsel %vm981_vm5, %v972_v39, %v2103_v6  ;;  %v761_v48 = vadd.f32 %v757_v11, %v692_v56  ;;  %v1989_v39 = vld [vmem:[%s3099_s3 + $0x10] ss:$8 sm:$0x3] }
 0x19a   : > { %v802_v63 = vmul.f32 %v794_v57, %v2734_v1  ;;  %v990_v40 = vmul.f32 %v982_v62, %v2740_v49  ;;  %v991_v6 = vmul.f32 %v983_v20, %v2745_v46  ;;  %v875_v11 = vmul.f32 %v2642_v26, %v861_v58 }
 0x19b   : > { %v2787_v2 = vrot.slane %v1989_v39, %v711_v45  ;;  %v2792_v26 = vrot.slane %v1989_v39, %v2672_v38  ;;  %v2087_v38 = vunpack.i.l.bf16 %v2624_v22 }
 0x19c   : > { %v816_v8 = vmul.f32 %v2622_v21, %v802_v63  ;;  %v903_v7 = vpop.permute.xlu0 %902  ;;  %v1090_v47 = vpop.permute.xlu1 %1089  ;;  %v1004_v20 = vmul.f32 %v2656_v3, %v990_v40 }
 0x19d   : > { %v912_v57 = vsel %vm910_vm3, %v901_v60, %v903_v7  ;;  %v1100_v50 = vsel %vm1099_vm6, %v1088_v51, %v1090_v47  ;;  %v1101_v62 = vsel %vm1099_vm6, %v1090_v47, %v2113_v10  ;;  %v1005_v60 = vmul.f32 %v2656_v3, %v991_v6 }
 0x19e   : > { %v820_v56 = vadd.f32 %v816_v8, %v761_v48  ;;  %v920_v21 = vmul.f32 %v912_v57, %v2761_v0  ;;  %v1108_v63 = vmul.f32 %v1100_v50, %v2765_v34  ;;  %v1109_v10 = vmul.f32 %v1101_v62, %v2767_v14 }
 0x19f   : > { %v1008_v47 = vadd.f32 %v1004_v20, %v2725_v53  ;;  %v3151_v53 = vunpack.i.l.bf16 %v2602_v17 }
 0x1a0   : > { %v879_v51 = vadd.f32 %v875_v11, %v820_v56  ;;  %v934_v7 = vmul.f32 %v2646_v27, %v920_v21  ;;  %v1031_v31 = vpop.permute.xlu0 %1030  ;;  %v1149_v58 = vpop.permute.xlu1 %1148  ;;  %v1122_v39 = vmul.f32 %v2668_v35, %v1108_v63  ;;  %v1123_v56 = vmul.f32 %v2668_v35, %v1109_v10 }
 0x1a1   : > { %v1041_v48 = vsel %vm1040_vm7, %v2720_v4, %v1031_v31  ;;  %v1042_v40 = vsel %vm1040_vm7, %v1031_v31, %v2108_v9  ;;  %v1159_v45 = vsel %vm1158_vm8, %v1147_v59, %v1149_v58  ;;  %v1160_v27 = vsel %vm1158_vm8, %v1149_v58, %v2118_v61 }
 0x1a2   : > { %v938_v8 = vadd.f32 %v934_v7, %v879_v51  ;;  %v1049_v3 = vmul.f32 %v1041_v48, %v2770_v18  ;;  %v1050_v6 = vmul.f32 %v1042_v40, %v2774_v44  ;;  %v1168_v57 = vmul.f32 %v1160_v27, %v2787_v2 }
 0x1a3   : > { %v1167_v9 = vmul.f32 %v1159_v45, %v2792_v26  ;;  %v2097_v51 = vunpack.i.l.bf16 %v2648_v28  ;;  %v693_v35 = vmul.f32 %v2596_v16, %v2554_v13 }
 0x1a4   : > { %v1009_v4 = vadd.f32 %v1005_v60, %v938_v8  ;;  %v1063_v31 = vmul.f32 %v2658_v5, %v1049_v3  ;;  %v1064_v59 = vmul.f32 %v2658_v5, %v1050_v6  ;;  %v789_v50 = vpop.permute.xlu1 %788  ;;  %v730_v11 = vpop.permute.xlu0 %729  ;;  %v1182_v21 = vmul.f32 %v2680_v41, %v1168_v57 }
 0x1a5   : > { %v795_v22 = vsel %vm792_vm1, %v2087_v38, %v789_v50  ;;  %v736_v62 = vsel %vm733_vm2, %v3151_v53, %v730_v11  ;;  %v2092_v60 = vunpack.i.l.bf16 %v2634_v23  ;;  %v1181_v7 = vmul.f32 %v2680_v41, %v1167_v9 }
 0x1a6   : > { %v1067_v61 = vadd.f32 %v1063_v31, %v1008_v47  ;;  %v1068_v20 = vadd.f32 %v1064_v59, %v1009_v4  ;;  %v803_v63 = vmul.f32 %v795_v22, %v2683_v42  ;;  %v744_v5 = vmul.f32 %v736_v62, %v2686_v43 }
 0x1a7   : > { %v694_v22 = vmul.f32 %v2596_v16, %v2548_v12 }
 0x1a8   : > { %v758_v58 = vmul.f32 %v2594_v15, %v744_v5  ;;  %v907_v17 = vpop.permute.xlu1 %906  ;;  %v848_v10 = vpop.permute.xlu0 %847  ;;  %v1126_v48 = vadd.f32 %v1122_v39, %v1067_v61  ;;  %v1127_v40 = vadd.f32 %v1123_v56, %v1068_v20  ;;  %v817_v45 = vmul.f32 %v2614_v19, %v803_v63 }
 0x1a9   : > { %v913_v42 = vsel %vm910_vm3, %v2097_v51, %v907_v17  ;;  %v854_v43 = vsel %vm851_vm4, %v2092_v60, %v848_v10  ;;  %v2107_v60 = vunpack.i.l.bf16 %v2660_v32 }
 0x1aa   : > { %v762_v23 = vadd.f32 %v758_v58, %v693_v35  ;;  %v921_v28 = vmul.f32 %v913_v42, %v2702_v52  ;;  %v862_v8 = vmul.f32 %v854_v43, %v2707_v55  ;;  %v2828_v13 = vadd.f32 %v1181_v7, %v1126_v48 }
 0x1ab   : > { %v2830_v41 = vadd.f32 %v1182_v21, %v1127_v40 }
 0x1ac   : > { %v821_v3 = vadd.f32 %v817_v45, %v762_v23  ;;  %v876_v6 = vmul.f32 %v2636_v24, %v862_v8  ;;  %v976_v27 = vpop.permute.xlu1 %975  ;;  %v1035_v38 = vpop.permute.xlu0 %1034  ;;  %v935_v47 = vmul.f32 %v2640_v25, %v921_v28  ;;  %v3152_v23 = vld [vmem:[#allocation10_spill] sm:$0xff] }
 0x1ae   : > { %v880_v39 = vadd.f32 %v876_v6, %v821_v3 }
 0x1b0   : > { %v1094_v57 = vpop.permute.xlu1 %1093  ;;  %v1153_v4 = vpop.permute.xlu0 %1152  ;;  %v939_v31 = vadd.f32 %v935_v47, %v880_v39 }
 0x1b4   : > { %v791_v59 = vpop.permute.xlu0 %790  ;;  %v732_v9 = vpop.permute.xlu1 %731 }
 0x1b5   : > { %v796_v52 = vsel %vm792_vm1, %v789_v50, %v791_v59  ;;  %v737_v55 = vsel %vm733_vm2, %v730_v11, %v732_v9  ;;  %v3154_v59 = vld [vmem:[#allocation12_spill] sm:$0xff] }
 0x1b6   : > { %v804_v56 = vmul.f32 %v796_v52, %v2734_v1  ;;  %v745_v21 = vmul.f32 %v737_v55, %v2723_v54  ;;  %v2102_v54 = vunpack.i.l.bf16 %v2650_v29 }
 0x1b8   : > { %v759_v53 = vmul.f32 %v2594_v15, %v745_v21  ;;  %v909_v62 = vpop.permute.xlu0 %908  ;;  %v850_v61 = vpop.permute.xlu1 %849  ;;  %v818_v5 = vmul.f32 %v2614_v19, %v804_v56 }
 0x1b9   : > { %v914_v20 = vsel %vm910_vm3, %v907_v17, %v909_v62  ;;  %v855_v63 = vsel %vm851_vm4, %v848_v10, %v850_v61  ;;  %v2112_v17 = vunpack.i.l.bf16 %v2662_v33 }
 0x1ba   : > { %v763_v50 = vadd.f32 %v759_v53, %v694_v22  ;;  %v922_v11 = vmul.f32 %v914_v20, %v2761_v0  ;;  %v863_v1 = vmul.f32 %v855_v63, %v2732_v36 }
 0x1bc   : > { %v822_v12 = vadd.f32 %v818_v5, %v763_v50  ;;  %v877_v15 = vmul.f32 %v2636_v24, %v863_v1  ;;  %v978_v16 = vpop.permute.xlu0 %977  ;;  %v1037_v51 = vpop.permute.xlu1 %1036  ;;  %v936_v0 = vmul.f32 %v2640_v25, %v922_v11  ;;  %v2117_v25 = vunpack.i.l.bf16 %v2670_v37 }
 0x1bd   : > { %v984_v35 = vsel %vm981_vm5, %v976_v27, %v978_v16  ;;  %v985_v7 = vsel %vm981_vm5, %v978_v16, %v2102_v54  ;;  %v1043_v19 = vsel %vm1040_vm7, %v1035_v38, %v1037_v51  ;;  %v1044_v58 = vsel %vm1040_vm7, %v1037_v51, %v2107_v60  ;;  %v3153_v27 = vld [vmem:[#allocation11_spill] sm:$0xff] }
 0x1be   : > { %v881_v36 = vadd.f32 %v877_v15, %v822_v12  ;;  %v992_v29 = vmul.f32 %v984_v35, %v2740_v49  ;;  %v993_v32 = vmul.f32 %v985_v7, %v2745_v46  ;;  %v1052_v24 = vmul.f32 %v1044_v58, %v2774_v44 }
 0x1bf   : > { %v1051_v45 = vmul.f32 %v1043_v19, %v2770_v18 }
 0x1c0   : > { %v940_v10 = vadd.f32 %v936_v0, %v881_v36  ;;  %v1006_v48 = vmul.f32 %v2652_v30, %v992_v29  ;;  %v1007_v40 = vmul.f32 %v2652_v30, %v993_v32  ;;  %v1096_v42 = vpop.permute.xlu0 %1095  ;;  %v1155_v43 = vpop.permute.xlu1 %1154  ;;  %v1066_v28 = vmul.f32 %v3152_v23, %v1052_v24 }
 0x1c1   : > { %v1102_v49 = vsel %vm1099_vm6, %v1094_v57, %v1096_v42  ;;  %v1103_v46 = vsel %vm1099_vm6, %v1096_v42, %v2112_v17  ;;  %v1162_v30 = vsel %vm1158_vm8, %v1155_v43, %v2117_v25  ;;  %v1065_v18 = vmul.f32 %v3152_v23, %v1051_v45 }
 0x1c2   : > { %v1010_v33 = vadd.f32 %v1006_v48, %v939_v31  ;;  %v1011_v8 = vadd.f32 %v1007_v40, %v940_v10  ;;  %v1110_v44 = vmul.f32 %v1102_v49, %v2765_v34  ;;  %v1111_v3 = vmul.f32 %v1103_v46, %v2767_v14 }
 0x1c3   : > { %v1161_v37 = vsel %vm1158_vm8, %v1153_v4, %v1155_v43  ;;  %v1170_v47 = vmul.f32 %v1162_v30, %v2787_v2  ;;  %v3155_v25 = vmov 0.0  }
 0x1c4   : > { %v1070_v6 = vadd.f32 %v1066_v28, %v1011_v8  ;;  %v1125_v38 = vmul.f32 %v3153_v27, %v1111_v3  ;;  %v1069_v39 = vadd.f32 %v1065_v18, %v1010_v33  ;;  %v1124_v57 = vmul.f32 %v3153_v27, %v1110_v44  ;;  %2018 = vmatprep.mubr.msk.f32.mxu1 %vm2295_vm9, %v3155_v25  ;;  %v1254_v33 = vld [vmem:[%s3100_s4] sm:$0xff]  ;;  %v1331_v27 = vld [vmem:[%s3102_s6 + $0x8] sm:$0xff] }
 0x1c5   : > { %v1184_v9 = vmul.f32 %v3154_v59, %v1170_v47  ;;  %v1169_v34 = vmul.f32 %v1161_v37, %v2792_v26  ;;  %v1330_v8 = vld [vmem:[%s3102_s6] sm:$0xff] }
 0x1c6   : > { %v1129_v31 = vadd.f32 %v1125_v38, %v1070_v6  ;;  %v1128_v52 = vadd.f32 %v1124_v57, %v1069_v39  ;;  %v1255_v44 = vld [vmem:[%s3101_s5] sm:$0xff]  ;;  %v1333_v38 = vld [vmem:[%s3103_s7 + $0x8] sm:$0xff] }
 0x1c7   : > { %v1183_v55 = vmul.f32 %v3154_v59, %v1169_v34  ;;  %v1332_v47 = vld [vmem:[%s3103_s7] sm:$0xff] }
 0x1c8   : > { %v1188_v14 = vadd.f32 %v1184_v9, %v1129_v31 }
 0x1c9   : > { %v1187_v22 = vadd.f32 %v1183_v55, %v1128_v52 }
 0x1cd   : > { %v1201_v56 = vpop.permute.xlu0 %1200  ;;  %v1196_v21 = vpop.permute.xlu1 %1195 }
 0x1ce   : > { %v1205_v53 = vmul.f32 %v1201_v56, %v1187_v22  ;;  %v1206_v62 = vmul.f32 %v1201_v56, %v1188_v14  ;;  %v1203_v4 = vmul.f32 %v1196_v21, %v2828_v13  ;;  %v1204_v2 = vmul.f32 %v1196_v21, %v2830_v41 }
 0x1d1   : > { %v1215_v61 = vpop.permute.xlu0 %1214  ;;  %v1210_v20 = vpop.permute.xlu1 %1209 }
 0x1d2   : > { %v1219_v63 = vadd.f32 %v1215_v61, %v1205_v53  ;;  %v1220_v5 = vadd.f32 %v1215_v61, %v1206_v62  ;;  %v1217_v50 = vadd.f32 %v1210_v20, %v1203_v4  ;;  %v1218_v11 = vadd.f32 %v1210_v20, %v1204_v2  ;;  %v1548_v62 = vld [vmem:[%s3108_s12 + $0x18] sm:$0xff]  ;;  %v1547_v4 = vld [vmem:[%s3108_s12 + $0x10] sm:$0xff]  ;;  %v1546_v61 = vld [vmem:[%s3108_s12 + $0x8] sm:$0xff] }
 0x1d3   : > { %v1552_v2 = vld [vmem:[%s3109_s13 + $0x18] sm:$0xff]  ;;  %v1551_v20 = vld [vmem:[%s3109_s13 + $0x10] sm:$0xff] }
 0x1d4   : > { %v1223_v26 = vsub.f32 0.0, %v1219_v63  ;;  %v1224_v1 = vsub.f32 0.0, %v1220_v5  ;;  %v1221_v54 = vsub.f32 0.0, %v1217_v50  ;;  %v1222_v60 = vsub.f32 0.0, %v1218_v11 }
 0x1d6   : > { %v1229_v12 = vmul.f32 1.442695, %v1223_v26  ;;  %v1231_v15 = vmul.f32 1.442695, %v1224_v1  ;;  %v1225_v16 = vmul.f32 1.442695, %v1221_v54 }
 0x1d7   : > { %v1227_v51 = vmul.f32 1.442695, %v1222_v60  ;;  %v1763_v26 = vld [vmem:[%s3110_s14 + $0x8] sm:$0xff]  ;;  %v1764_v1 = vld [vmem:[%s3110_s14 + $0x10] sm:$0xff]  ;;  %v1765_v54 = vld [vmem:[%s3110_s14 + $0x18] sm:$0xff] }
 0x1d8   : > { %2135 = vpow2.f32 %v1229_v12  ;;  %v1794_v60 = vld [vmem:[%s3111_s15] sm:$0xff]  ;;  %v1795_v12 = vld [vmem:[%s3111_s15 + $0x8] sm:$0xff] }
 0x1d9   : > { %2137 = vpow2.f32 %v1231_v15  ;;  %v1796_v15 = vld [vmem:[%s3111_s15 + $0x10] sm:$0xff] }
 0x1da   : > { %2139 = vpow2.f32 %v1225_v16  ;;  %v1797_v16 = vld [vmem:[%s3111_s15 + $0x18] sm:$0xff] }
 0x1db   : > { %2141 = vpow2.f32 %v1227_v51 }
 0x1e5   : > { %v2136_v13 = vpop.eup %2135 }
 0x1e6   : > { %v2138_v41 = vpop.eup %2137  ;;  %v1235_v35 = vadd.f32 1.0, %v2136_v13 }
 0x1e7   : > { %v2140_v7 = vpop.eup %2139  ;;  %v1236_v19 = vadd.f32 1.0, %v2138_v41 }
 0x1e8   : > { %v2142_v58 = vpop.eup %2141  ;;  %2143 = vrcp.f32 %v1235_v35  ;;  %v1233_v0 = vadd.f32 1.0, %v2140_v7 }
 0x1e9   : > { %2145 = vrcp.f32 %v1236_v19  ;;  %v1234_v36 = vadd.f32 1.0, %v2142_v58  ;;  %v1440_v58 = vld [vmem:[%s3104_s8] sm:$0xff] }
 0x1ea   : > { %2147 = vrcp.f32 %v1233_v0  ;;  %v1441_v0 = vld [vmem:[%s3104_s8 + $0x8] sm:$0xff] }
 0x1eb   : > { %2149 = vrcp.f32 %v1234_v36  ;;  %v1442_v36 = vld [vmem:[%s3104_s8 + $0x10] sm:$0xff] }
 0x1f5   : > { %v2144_v29 = vpop.eup %2143 }
 0x1f6   : > { %v2146_v32 = vpop.eup %2145  ;;  %v2878_v17 = vmul.f32 %v2144_v29, %v1219_v63  ;;  %v1545_v63 = vld [vmem:[%s3108_s12] sm:$0xff]  ;;  %v1443_v29 = vld [vmem:[%s3104_s8 + $0x18] sm:$0xff] }
 0x1f7   : > { %v2148_v24 = vpop.eup %2147  ;;  %v2880_v10 = vmul.f32 %v2146_v32, %v1220_v5  ;;  %v1550_v5 = vld [vmem:[%s3109_s13 + $0x8] sm:$0xff] }
 0x1f8   : > { %v2150_v48 = vpop.eup %2149  ;;  %v2882_v40 = vmul.f32 %v2148_v24, %v1217_v50  ;;  %v1549_v50 = vld [vmem:[%s3109_s13] sm:$0xff] }
 0x1f9   : > { %v2884_v45 = vmul.f32 %v2150_v48, %v1218_v11  ;;  %v1248_v42 = vadd.f32 %v2880_v10, %v2878_v17  ;;  %v1762_v11 = vld [vmem:[%s3110_s14] sm:$0xff] }
 0x1fb   : > { %v1245_v43 = vadd.f32 %v2884_v45, %v2882_v40  ;;  %1249 = vadd.xlane.f32.xlu0 %v1248_v42 }
 0x1fd   : > { %1246 = vadd.xlane.f32.xlu1 %v1245_v43 }
 0x284   : > { %v1250_v23 = vpop.xlane.xlu0 %1249 }
 0x285   : > { %v1253_v28 = vmul.f32 0.00390625, %v1250_v23 }
 0x286   : > { %v1247_v49 = vpop.xlane.xlu1 %1246 }
 0x287   : > { %v1252_v46 = vmul.f32 0.00390625, %v1247_v49  ;;  %2015 = vmatpush3.msra.mxu1 %v1253_v28 }
 0x288   : > { %2016 = vmatprep.subr.mxu1 %v3155_v25 }
 0x289   : > { %2017 = vmatpush3.msra.mxu1 %v1252_v46 }
 0x28a   : > { %2019 = vmatmul.mubr.msk.f32.vlgmr.msra.gmra.mxu1 %vm792_vm1, %v1254_v33 }
 0x28b   : > { %2023 = vmatprep.mubr.msk.f32.mxu1 %vm1334_vm10, %v1330_v8 }
 0x34a   : > { %v1325_v3 = vpop.f32.mrf.mxu1 }
 0x34b   : > { %v1326_v30 = vadd.f32 %v1325_v3, %v1255_v44 }
 0x34c   : > { %v2020_v18 = vpop.f32.mrf.mxu1 }
 0x34d   : > { %v1329_v6 = vmax.f32 %v1326_v30, 0.0 }
 0x34f   : > { %2021 = vmatprep.subr.mxu1 %v1329_v6 }
 0x350   : > { %2022 = vmatpush3.msra.mxu1 %v1329_v6 }
 0x351   : > { %2024 = vmatmul.mubr.msk.f32.vlgmr.msra.gmra.mxu1 %vm1334_vm10, %v1331_v27 }
 0x352   : > { %1737 = vmatprep.mubr.f32.mxu1 %v3155_v25 }
 0x411   : > { %v2025_v37 = vpop.f32.mrf.mxu1 }
 0x412   : > { %v1413_v39 = vadd.f32 %v2025_v37, %v1333_v38 }
 0x413   : > { %v1407_v57 = vpop.f32.mrf.mxu1 }
 0x414   : > { %v1417_v31 = vsub.f32 0.0, %v1413_v39  ;;  %v1408_v59 = vadd.f32 %v1407_v57, %v1332_v47 }
 0x416   : > { %v1420_v9 = vmul.f32 1.442695, %v1417_v31  ;;  %v1416_v34 = vsub.f32 0.0, %v1408_v59 }
 0x418   : > { %2151 = vpow2.f32 %v1420_v9  ;;  %v1418_v14 = vmul.f32 1.442695, %v1416_v34 }
 0x41a   : > { %2153 = vpow2.f32 %v1418_v14 }
 0x425   : > { %v2152_v52 = vpop.eup %2151 }
 0x426   : > { %v1423_v55 = vadd.f32 1.0, %v2152_v52 }
 0x427   : > { %v2154_v56 = vpop.eup %2153 }
 0x428   : > { %2155 = vrcp.f32 %v1423_v55  ;;  %v1422_v21 = vadd.f32 1.0, %v2154_v56 }
 0x42a   : > { %2157 = vrcp.f32 %v1422_v21 }
 0x435   : > { %v2156_v22 = vpop.eup %2155 }
 0x436   : > { %1433 = vperm.xlu0 %2077, %v2156_v22  }
 0x437   : > { %v2158_v53 = vpop.eup %2157 }
 0x438   : > { %1428 = vperm.xlu1 %2078, %v2158_v53  }
 0x43a   : > { %1570 = vperm.xlu0 %2077, %v1548_v62  }
 0x43c   : > { %1565 = vperm.xlu1 %2078, %v1547_v4  }
 0x43e   : > { %1598 = vperm.xlu0 %2077, %v1552_v2  }
 0x440   : > { %1560 = vperm.xlu1 %2078, %v1546_v61  }
 0x442   : > { %1593 = vperm.xlu0 %2077, %v1551_v20  }
 0x444   : > { %1555 = vperm.xlu1 %2078, %v1545_v63  }
 0x446   : > { %1588 = vperm.xlu0 %2077, %v1550_v5  }
 0x448   : > { %1583 = vperm.xlu1 %2078, %v1549_v50  }
 0x44a   : > { %1768 = vperm.xlu0 %2077, %v1762_v11  }
 0x44c   : > { %1773 = vperm.xlu1 %2078, %v1763_v26  }
 0x44e   : > { %1778 = vperm.xlu0 %2077, %v1764_v1  }
 0x450   : > { %1783 = vperm.xlu1 %2078, %v1765_v54  }
 0x452   : > { %1800 = vperm.xlu0 %2077, %v1794_v60  }
 0x454   : > { %1805 = vperm.xlu1 %2078, %v1795_v12  }
 0x456   : > { %1810 = vperm.xlu0 %2077, %v1796_v15  }
 0x458   : > { %1815 = vperm.xlu1 %2078, %v1797_v16  }
 0x4b1   : > { %v1434_v51 = vpop.permute.xlu0 %1433 }
 0x4b2   : > { %v1438_v13 = vmul.f32 %v1434_v51, %v2878_v17  ;;  %v1439_v41 = vmul.f32 %v1434_v51, %v2880_v10 }
 0x4b3   : > { %v1429_v35 = vpop.permute.xlu1 %1428 }
 0x4b4   : > { %v1436_v7 = vmul.f32 %v1429_v35, %v2882_v40  ;;  %v1437_v19 = vmul.f32 %v1429_v35, %v2884_v45  ;;  %1484 = vmatprep.subr.mxu0 %v1439_v41 }
 0x4b5   : > { %1485 = vmatpush1.msra.mxu0 %v1438_v13  ;;  %v1571_v17 = vpop.permute.xlu0 %1570 }
 0x4b6   : > { %1486 = vmatprep.subr.mxu0 %v1437_v19 }
 0x4b7   : > { %1487 = vmatpush1.msra.mxu0 %v1436_v7  ;;  %v1566_v32 = vpop.permute.xlu1 %1565 }
 0x4b8   : > { %1993 = vmatmul.mubr.msk.f32.vlgmr.msra.gmra.mxu0 %vm530_vm0, %v1440_v58 }
 0x4b9   : > { %1526 = vmatprep.mubr.f32.mxu0 %v3155_v25  ;;  %v1599_v10 = vpop.permute.xlu0 %1598 }
 0x4bb   : > { %v1561_v24 = vpop.permute.xlu1 %1560 }
 0x4bc   : > { %1994 = vmatmul.mubr.msk.f32.gmra.mxu0 %vm530_vm0, %v1441_v0 }
 0x4bd   : > { %1532 = vmatprep.mubr.f32.mxu0 %v3155_v25  ;;  %v1594_v45 = vpop.permute.xlu0 %1593 }
 0x4bf   : > { %v1556_v48 = vpop.permute.xlu1 %1555 }
 0x4c0   : > { %1995 = vmatmul.mubr.msk.f32.gmra.mxu0 %vm530_vm0, %v1442_v36 }
 0x4c1   : > { %1538 = vmatprep.mubr.f32.mxu0 %v3155_v25  ;;  %v1589_v44 = vpop.permute.xlu0 %1588 }
 0x4c3   : > { %v1584_v23 = vpop.permute.xlu1 %1583 }
 0x4c4   : > { %1996 = vmatmul.mubr.msk.f32.gmra.mxu0 %vm530_vm0, %v1443_v29 }
 0x578   : > { %v1522_v40 = vpop.f32.mrf.mxu0 }
 0x579   : > { %v1573_v3 = vmul.f32 %v1556_v48, %v1522_v40 }
 0x57a   : > { %v1524_v42 = vpop.f32.mrf.mxu0 }
 0x57b   : > { %v1574_v43 = vmul.f32 %v1556_v48, %v1524_v42  ;;  %v2991_v57 = vadd.f32 %v1584_v23, %v1573_v3 }
 0x57c   : > { %v1528_v28 = vpop.f32.mrf.mxu0 }
 0x57d   : > { %v2983_v49 = vadd.f32 %v1584_v23, %v1574_v43  ;;  %v1575_v46 = vmul.f32 %v1561_v24, %v1528_v28  ;;  %v1609_v4 = vsub.f32 0.0, %v2991_v57 }
 0x57e   : > { %v1530_v33 = vpop.f32.mrf.mxu0 }
 0x57f   : > { %v1576_v8 = vmul.f32 %v1561_v24, %v1530_v33  ;;  %v1610_v18 = vsub.f32 0.0, %v2983_v49  ;;  %v2988_v27 = vadd.f32 %v1589_v44, %v1575_v46  ;;  %v1617_v26 = vmul.f32 1.442695, %v1609_v4 }
 0x580   : > { %v1534_v30 = vpop.f32.mrf.mxu0 }
 0x581   : > { %v2986_v6 = vadd.f32 %v1589_v44, %v1576_v8  ;;  %v1577_v38 = vmul.f32 %v1566_v32, %v1534_v30  ;;  %v1619_v9 = vmul.f32 1.442695, %v1610_v18  ;;  %v1611_v52 = vsub.f32 0.0, %v2988_v27  ;;  %v1657_v18 = vld [vmem:[%s3105_s9] sm:$0xff] }
 0x582   : > { %v1536_v37 = vpop.f32.mrf.mxu0 }
 0x583   : > { %v1612_v47 = vsub.f32 0.0, %v2986_v6  ;;  %v1578_v39 = vmul.f32 %v1566_v32, %v1536_v37  ;;  %v2993_v31 = vadd.f32 %v1594_v45, %v1577_v38  ;;  %2159 = vpow2.f32 %v1619_v9  ;;  %v1769_v38 = vpop.permute.xlu0 %1768  ;;  %v1774_v37 = vpop.permute.xlu1 %1773 }
 0x584   : > { %v1540_v59 = vpop.f32.mrf.mxu0  ;;  %v1621_v5 = vmul.f32 1.442695, %v1611_v52 }
 0x585   : > { %v1606_v34 = vadd.f32 %v1594_v45, %v1578_v39  ;;  %v1579_v14 = vmul.f32 %v1571_v17, %v1540_v59  ;;  %v1623_v55 = vmul.f32 1.442695, %v1612_v47  ;;  %v1613_v56 = vsub.f32 0.0, %v2993_v31 }
 0x586   : > { %v1542_v21 = vpop.f32.mrf.mxu0 }
 0x587   : > { %v1614_v22 = vsub.f32 0.0, %v1606_v34  ;;  %v1607_v53 = vadd.f32 %v1599_v10, %v1579_v14  ;;  %v1580_v62 = vmul.f32 %v1571_v17, %v1542_v21  ;;  %v1625_v2 = vmul.f32 1.442695, %v1613_v56  ;;  %v1779_v47 = vpop.permute.xlu0 %1778  ;;  %v1784_v39 = vpop.permute.xlu1 %1783 }
 0x588   : > { %2161 = vpow2.f32 %v1623_v55 }
 0x589   : > { %v1627_v61 = vmul.f32 1.442695, %v1614_v22  ;;  %v1615_v20 = vsub.f32 0.0, %v1607_v53  ;;  %v1608_v63 = vadd.f32 %v1599_v10, %v1580_v62 }
 0x58b   : > { %2163 = vpow2.f32 %v1627_v61  ;;  %v1629_v50 = vmul.f32 1.442695, %v1615_v20  ;;  %v1616_v11 = vsub.f32 0.0, %v1608_v63  ;;  %v1801_v59 = vpop.permute.xlu0 %1800  ;;  %v1806_v21 = vpop.permute.xlu1 %1805 }
 0x58c   : > { %2165 = vpow2.f32 %v1625_v2 }
 0x58d   : > { %2167 = vpow2.f32 %v1629_v50  ;;  %v1631_v1 = vmul.f32 1.442695, %v1616_v11 }
 0x58e   : > { %2169 = vpow2.f32 %v1621_v5 }
 0x58f   : > { %2171 = vpow2.f32 %v1631_v1 }
 0x590   : > { %2173 = vpow2.f32 %v1617_v26  ;;  %v2160_v54 = vpop.eup %2159  ;;  %v1811_v26 = vpop.permute.xlu0 %1810 }
 0x591   : > { %v1634_v29 = vadd.f32 1.0, %v2160_v54 }
 0x595   : > { %v2162_v60 = vpop.eup %2161 }
 0x596   : > { %v1636_v58 = vadd.f32 1.0, %v2162_v60 }
 0x598   : > { %v2164_v12 = vpop.eup %2163 }
 0x599   : > { %v2166_v15 = vpop.eup %2165  ;;  %v1638_v16 = vadd.f32 1.0, %v2164_v12 }
 0x59a   : > { %v2168_v51 = vpop.eup %2167  ;;  %v1637_v7 = vadd.f32 1.0, %v2166_v15 }
 0x59b   : > { %v2170_v13 = vpop.eup %2169  ;;  %v1639_v41 = vadd.f32 1.0, %v2168_v51  ;;  %2175 = vrcp.f32 %v1638_v16 }
 0x59c   : > { %v2172_v35 = vpop.eup %2171  ;;  %v1635_v36 = vadd.f32 1.0, %v2170_v13 }
 0x59d   : > { %v2174_v19 = vpop.eup %2173  ;;  %v1640_v0 = vadd.f32 1.0, %v2172_v35  ;;  %2177 = vrcp.f32 %v1639_v41  ;;  %v1816_v41 = vpop.permute.xlu1 %1815 }
 0x59e   : > { %v1633_v32 = vadd.f32 1.0, %v2174_v19 }
 0x59f   : > { %2179 = vrcp.f32 %v1640_v0 }
 0x5a0   : > { %2181 = vrcp.f32 %v1637_v7 }
 0x5a1   : > { %2183 = vrcp.f32 %v1636_v58 }
 0x5a2   : > { %2185 = vrcp.f32 %v1635_v36 }
 0x5a3   : > { %2187 = vrcp.f32 %v1634_v29 }
 0x5a4   : > { %2189 = vrcp.f32 %v1633_v32 }
 0x5a8   : > { %v2176_v17 = vpop.eup %2175 }
 0x5a9   : > { %v1654_v23 = vmul.f32 %v2176_v17, %v1606_v34 }
 0x5aa   : > { %v2178_v24 = vpop.eup %2177 }
 0x5ab   : > { %v1655_v42 = vmul.f32 %v2178_v24, %v1607_v53 }
 0x5ac   : > { %v2180_v10 = vpop.eup %2179 }
 0x5ad   : > { %v2182_v48 = vpop.eup %2181  ;;  %v1656_v40 = vmul.f32 %v2180_v10, %v1608_v63 }
 0x5ae   : > { %v2184_v45 = vpop.eup %2183  ;;  %v1653_v46 = vmul.f32 %v2182_v48, %v2993_v31 }
 0x5af   : > { %v2186_v43 = vpop.eup %2185  ;;  %1697 = vmatprep.subr.mxu1 %v1656_v40  ;;  %v1652_v8 = vmul.f32 %v2184_v45, %v2986_v6  ;;  %v1658_v6 = vld [vmem:[%s3105_s9 + $0x8] sm:$0xff] }
 0x5b0   : > { %v2188_v28 = vpop.eup %2187  ;;  %1698 = vmatpush1.msra.mxu1 %v1655_v42  ;;  %v1651_v44 = vmul.f32 %v2186_v43, %v2988_v27  ;;  %v1660_v27 = vld [vmem:[%s3105_s9 + $0x18] sm:$0xff] }
 0x5b1   : > { %v2190_v33 = vpop.eup %2189  ;;  %1699 = vmatprep.subr.mxu1 %v1654_v23  ;;  %v1650_v3 = vmul.f32 %v2188_v28, %v2983_v49  ;;  %v1659_v49 = vld [vmem:[%s3105_s9 + $0x10] sm:$0xff] }
 0x5b2   : > { %1700 = vmatpush1.msra.mxu1 %v1653_v46  ;;  %v1649_v30 = vmul.f32 %v2190_v33, %v2991_v57 }
 0x5b3   : > { %1701 = vmatprep.subr.mxu1 %v1652_v8 }
 0x5b4   : > { %1702 = vmatpush1.msra.mxu1 %v1651_v44 }
 0x5b5   : > { %1703 = vmatprep.subr.mxu1 %v1650_v3 }
 0x5b6   : > { %1704 = vmatpush1.msra.mxu1 %v1649_v30 }
 0x5b7   : > { %1997 = vmatmul.mubr.msk.f32.vlgmr.msra.gmra.mxu1 %vm530_vm0, %v1657_v18 }
 0x5b8   : > { %1743 = vmatprep.mubr.f32.mxu1 %v3155_v25 }
 0x5bb   : > { %1998 = vmatmul.mubr.msk.f32.gmra.mxu1 %vm530_vm0, %v1658_v6 }
 0x5bc   : > { %1749 = vmatprep.mubr.f32.mxu1 %v3155_v25 }
 0x5bf   : > { %1999 = vmatmul.mubr.msk.f32.gmra.mxu1 %vm530_vm0, %v1659_v49 }
 0x5c0   : > { %1755 = vmatprep.mubr.f32.mxu1 %v3155_v25 }
 0x5c3   : > { %2000 = vmatmul.mubr.msk.f32.gmra.mxu1 %vm530_vm0, %v1660_v27 }
 0x677   : > { %v1739_v57 = vpop.f32.mrf.mxu1 }
 0x678   : > { %v1786_v31 = vmul.f32 %v1769_v38, %v1739_v57 }
 0x679   : > { %v1741_v9 = vpop.f32.mrf.mxu1 }
 0x67a   : > { %v3022_v34 = vadd.f32 %v1801_v59, %v1786_v31  ;;  %v1787_v14 = vmul.f32 %v1769_v38, %v1741_v9 }
 0x67b   : > { %v1745_v52 = vpop.f32.mrf.mxu1 }
 0x67c   : > { %v1826_v25 = vsub.f32 0.0, %v3022_v34  ;;  %v3025_v55 = vadd.f32 %v1801_v59, %v1787_v14  ;;  %v1788_v56 = vmul.f32 %v1774_v37, %v1745_v52 }
 0x67d   : > { %v1747_v22 = vpop.f32.mrf.mxu1 }
 0x67e   : > { %v1834_v53 = vmul.f32 1.442695, %v1826_v25  ;;  %v1827_v62 = vsub.f32 0.0, %v3025_v55  ;;  %v3028_v4 = vadd.f32 %v1806_v21, %v1788_v56  ;;  %v1789_v2 = vmul.f32 %v1774_v37, %v1747_v22 }
 0x67f   : > { %v1751_v61 = vpop.f32.mrf.mxu1 }
 0x680   : > { %2191 = vpow2.f32 %v1834_v53  ;;  %v1836_v20 = vmul.f32 1.442695, %v1827_v62  ;;  %v1828_v63 = vsub.f32 0.0, %v3028_v4  ;;  %v3031_v5 = vadd.f32 %v1806_v21, %v1789_v2 }
 0x681   : > { %v1790_v50 = vmul.f32 %v1779_v47, %v1751_v61  ;;  %v1753_v11 = vpop.f32.mrf.mxu1 }
 0x682   : > { %2193 = vpow2.f32 %v1836_v20  ;;  %v1838_v1 = vmul.f32 1.442695, %v1828_v63  ;;  %v1829_v54 = vsub.f32 0.0, %v3031_v5  ;;  %v1791_v60 = vmul.f32 %v1779_v47, %v1753_v11 }
 0x683   : > { %v3034_v12 = vadd.f32 %v1811_v26, %v1790_v50  ;;  %v1757_v15 = vpop.f32.mrf.mxu1 }
 0x684   : > { %2195 = vpow2.f32 %v1838_v1  ;;  %v1840_v16 = vmul.f32 1.442695, %v1829_v54  ;;  %v1823_v51 = vadd.f32 %v1811_v26, %v1791_v60  ;;  %v1792_v13 = vmul.f32 %v1784_v39, %v1757_v15 }
 0x685   : > { %v1830_v35 = vsub.f32 0.0, %v3034_v12  ;;  %v1759_v7 = vpop.f32.mrf.mxu1 }
 0x686   : > { %2197 = vpow2.f32 %v1840_v16  ;;  %v1831_v19 = vsub.f32 0.0, %v1823_v51  ;;  %v1824_v58 = vadd.f32 %v1816_v41, %v1792_v13  ;;  %v1793_v0 = vmul.f32 %v1784_v39, %v1759_v7 }
 0x687   : > { %v1842_v36 = vmul.f32 1.442695, %v1830_v35 }
 0x688   : > { %v1844_v29 = vmul.f32 1.442695, %v1831_v19  ;;  %v1832_v32 = vsub.f32 0.0, %v1824_v58  ;;  %v1825_v17 = vadd.f32 %v1816_v41, %v1793_v0 }
 0x689   : > { %2199 = vpow2.f32 %v1842_v36 }
 0x68a   : > { %2201 = vpow2.f32 %v1844_v29  ;;  %v1846_v24 = vmul.f32 1.442695, %v1832_v32  ;;  %v1833_v10 = vsub.f32 0.0, %v1825_v17 }
 0x68c   : > { %2203 = vpow2.f32 %v1846_v24  ;;  %v1848_v48 = vmul.f32 1.442695, %v1833_v10 }
 0x68d   : > { %v2192_v40 = vpop.eup %2191 }
 0x68e   : > { %v1850_v45 = vadd.f32 1.0, %v2192_v40  ;;  %2205 = vpow2.f32 %v1848_v48 }
 0x68f   : > { %v2194_v42 = vpop.eup %2193 }
 0x690   : > { %2207 = vrcp.f32 %v1850_v45  ;;  %v1851_v43 = vadd.f32 1.0, %v2194_v42 }
 0x691   : > { %v2196_v23 = vpop.eup %2195 }
 0x692   : > { %2209 = vrcp.f32 %v1851_v43  ;;  %v1852_v28 = vadd.f32 1.0, %v2196_v23 }
 0x693   : > { %v2198_v46 = vpop.eup %2197 }
 0x694   : > { %2211 = vrcp.f32 %v1852_v28  ;;  %v1853_v33 = vadd.f32 1.0, %v2198_v46 }
 0x696   : > { %v2200_v8 = vpop.eup %2199  ;;  %2213 = vrcp.f32 %v1853_v33 }
 0x697   : > { %v2202_v44 = vpop.eup %2201  ;;  %v1854_v3 = vadd.f32 1.0, %v2200_v8 }
 0x698   : > { %v1855_v30 = vadd.f32 1.0, %v2202_v44 }
 0x699   : > { %v2204_v18 = vpop.eup %2203  ;;  %2215 = vrcp.f32 %v1854_v3 }
 0x69a   : > { %2217 = vrcp.f32 %v1855_v30  ;;  %v1856_v6 = vadd.f32 1.0, %v2204_v18 }
 0x69b   : > { %v2206_v49 = vpop.eup %2205 }
 0x69c   : > { %2219 = vrcp.f32 %v1856_v6  ;;  %v1857_v27 = vadd.f32 1.0, %v2206_v49 }
 0x69d   : > { %v2208_v38 = vpop.eup %2207 }
 0x69e   : > { %v1866_v37 = vmul.f32 %v2208_v38, %v3022_v34  ;;  %2221 = vrcp.f32 %v1857_v27 }
 0x69f   : > { %v2210_v47 = vpop.eup %2209 }
 0x6a0   : > { %1874 = vst [vmem:[%s514_s18] sm:$0xff] %v1866_v37  ;;  %v1867_v39 = vmul.f32 %v2210_v47, %v3025_v55 }
 0x6a1   : > { %v2212_v57 = vpop.eup %2211 }
 0x6a2   : > { %1875 = vst [vmem:[%s514_s18 + $0x8] sm:$0xff] %v1867_v39  ;;  %v1868_v31 = vmul.f32 %v2212_v57, %v3028_v4 }
 0x6a3   : > { %v2214_v59 = vpop.eup %2213 }
 0x6a4   : > { %1876 = vst [vmem:[%s514_s18 + $0x10] sm:$0xff] %v1868_v31  ;;  %v1869_v9 = vmul.f32 %v2214_v59, %v3031_v5 }
 0x6a6   : > { %v2216_v14 = vpop.eup %2215  ;;  %1877 = vst [vmem:[%s514_s18 + $0x18] sm:$0xff] %v1869_v9 }
 0x6a7   : > { %v2218_v52 = vpop.eup %2217  ;;  %v1870_v34 = vmul.f32 %v2216_v14, %v3034_v12 }
 0x6a8   : > { %v1871_v25 = vmul.f32 %v2218_v52, %v1823_v51 }
 0x6a9   : > { %v2220_v56 = vpop.eup %2219  ;;  %1878 = vst [vmem:[%s514_s18 + $0x20] sm:$0xff] %v1870_v34 }
 0x6aa   : > { %1879 = vst [vmem:[%s514_s18 + $0x28] sm:$0xff] %v1871_v25  ;;  %v1872_v55 = vmul.f32 %v2220_v56, %v1824_v58 }
 0x6ab   : > { %v2222_v21 = vpop.eup %2221 }
 0x6ac   : > { %1880 = vst [vmem:[%s514_s18 + $0x30] sm:$0xff] %v1872_v55  ;;  %v1873_v22 = vmul.f32 %v2222_v21, %v1825_v17 }
 0x6ae   : > { %1881 = vst [vmem:[%s514_s18 + $0x38] sm:$0xff] %v1873_v22 }
 0x6af   : > { %2236 = shalt.err (!%p2233_p3)
}
 0x6b0   : > { %s2237_s20 = scalar_lea.hbm %s3049_s27, 1024  ;;  %s2241_s30 = scalar_lea.hbm %s3112_s16, 2048 }
 0x6b1   : > { %p2238_p4 = scmp.ne.s32.totalorder %s3049_s27, %s2237_s20  ;;  %p2242_p9 = scmp.lt.s32.totalorder %s3049_s27, %s3112_s16 }
 0x6b2   : > { %p2243_p10 = scmp.lt.s32.totalorder %s2241_s30, %s2237_s20 }
 0x6b3   : > { %p2239_p7 = pnand %p2238_p4, %p2421_p5 }
 0x6b4   : > { %p2244_p11 = por %p2243_p10, %p2242_p9 }
 0x6b5   : > { %p2240_p8 = pneg %p2239_p7 }
 0x6b7   : > { %p2245_p12 = pnand %p2244_p11, %p2240_p8 }
 0x6b9   : > { %2248 = shalt.err (!%p2245_p12)
}
 0x6ba   : > { %s2297_s26 = smov 256   ;;  %s3156_s29 = smov 16  }
 0x6bb   : > { %2026 = dma.vmem_to_hbm [thread:$0]  (%p2421_p5), %s3051_s23, 1024, %s3049_s27, %s3055_s25, %s2297_s26, %s2297_s26, %s3156_s29  }
 0x6bc PF: > { %p2032_p13 = scmp.ge.s32.totalorder %s2283_s24, 2  ;;  %s1911_s18 = sand.u32 1, %s2271_s21  }
 0x6bd   : > { %s1912_s1 = scalar_lea.sflag [#allocation4], %s1911_s18 }
 0x6be   : > { %p2029_p0 = pnand %p2032_p13, %p2425_p6 }
 0x6c0   : > { %p2030_p1 = pneg %p2029_p0 }
 0x6c2   : > { %2266 = dma.done.wait (%p2030_p1), %s1912_s1, 1024  }
 0x6c3   : > { %2268 = vsyncadd (%p2030_p1), %s1912_s1, 4294966272  ;;  %s3158_s24 = sld [smem:[#allocation7_spill]]  ;;  %s3161_s21 = smov %s2275_s22 }
 0x6c4   : > { %s3159_s0 = sld [smem:[#allocation6_spill]] }
 0x6c5   : > { %s3160_s23 = sld [smem:[#allocation8_spill]] }
 0x6c9   : > { %p26_p2 = scmp.ge.s32.totalorder %s3158_s24, 4  }
 0x6ca   : > { %s3162_s22 = smov %s3159_s0 }
 0x6cb   :  { %28 = sbr.rel (!%p26_p2) target bundleno = 6 (0x6), region = 134 }
 0x6d0   :  { %1917 = vsyncpa [#allocation4], 1 }
 0x6d1   :  { %1919 = vsyncpa [#allocation4 + $0x1], 1 }

</bundles_post_ra>
